<compile_context>
chip_gen: v7x
topology: tpu7x:2x2x1
jax: 0.10.0
libtpu: 0.0.40
codegen_flags: <defaults>
</compile_context>

<pallas_src>
import functools
import math

import jax
import jax.numpy as jnp
from jax.experimental import pallas as pl
from jax.experimental.pallas import tpu as pltpu


# -----------------------------------------------------------------------------
# Fused kernel: RPN head (3x3 conv + ReLU, 1x1 cls/bbox) + sigmoid + box decode
# + clip-to-image.  One grid step == one image; everything stays in VMEM.
# -----------------------------------------------------------------------------
def _rpn_fused_kernel(xpad_ref, wconv_ref, bconv_ref, wheadt_ref, bheadt_ref,
                      anc_ref, probs_ref, boxes_ref,
                      *, H, W, C, A, G, im_w, im_h, bbox_xform_clip):
    # ---- im2col + single MXU matmul for the 3x3 'same' conv -----------------
    x = xpad_ref[0].astype(jnp.float32)                       # (H+2, W+2, C)
    patches = [x[ky:ky + H, kx:kx + W, :].reshape(H * W, C)
               for ky in range(3) for kx in range(3)]
    col = jnp.concatenate(patches, axis=1)                    # (H*W, 9C) f32
    hid = jnp.dot(col.astype(jnp.bfloat16), wconv_ref[...],
                  preferred_element_type=jnp.float32)         # (H*W, Cmid)
    hid = jnp.maximum(hid + bconv_ref[...], 0.0)              # ReLU (f32)

    # ---- fused 1x1 cls + bbox convs, channel-major (lane axis == H*W) -------
    # head_t[g, m] = sum_c wheadt[g, c] * hid[m, c]   -> (5G, H*W)
    head_t = jax.lax.dot_general(
        wheadt_ref[...], hid,
        dimension_numbers=(((1,), (1,)), ((), ())),
        preferred_element_type=jnp.float32)
    head_t = head_t + bheadt_ref[...]                         # (5G,1) lane bcast

    logits = head_t[0 * G:0 * G + A, :]                       # (A, H*W)
    dx = head_t[1 * G:1 * G + A, :]
    dy = head_t[2 * G:2 * G + A, :]
    dw = jnp.minimum(head_t[3 * G:3 * G + A, :], bbox_xform_clip)
    dh = jnp.minimum(head_t[4 * G:4 * G + A, :], bbox_xform_clip)

    # ---- BoxCoder.decode (weights (1,1,1,1)) + clip_to_image ----------------
    widths = anc_ref[0]                                       # (A, H*W)
    heights = anc_ref[1]
    ctr_x = anc_ref[2]
    ctr_y = anc_ref[3]

    pred_ctr_x = dx * widths + ctr_x
    pred_ctr_y = dy * heights + ctr_y
    pred_w = jnp.exp(dw) * widths
    pred_h = jnp.exp(dh) * heights

    x1 = jnp.clip(pred_ctr_x - 0.5 * pred_w, 0.0, im_w - 1.0)
    y1 = jnp.clip(pred_ctr_y - 0.5 * pred_h, 0.0, im_h - 1.0)
    x2 = jnp.clip(pred_ctr_x + 0.5 * pred_w - 1.0, 0.0, im_w - 1.0)
    y2 = jnp.clip(pred_ctr_y + 0.5 * pred_h - 1.0, 0.0, im_h - 1.0)

    probs_ref[0, :, :] = jax.nn.sigmoid(logits)               # (A, H*W)
    boxes_ref[0, 0, :, :] = x1
    boxes_ref[0, 1, :, :] = y1
    boxes_ref[0, 2, :, :] = x2
    boxes_ref[0, 3, :, :] = y2


# -----------------------------------------------------------------------------
# Weight packing: conv weight as (9C, Cmid); cls + bbox packed into one
# coordinate-major, sublane-aligned (5G, Cmid) weight.
# -----------------------------------------------------------------------------
def _pack_head_weights(params, A, G):
    w_conv = params["w_conv"]                       # (3, 3, C, Cmid)
    C, Cmid = w_conv.shape[2], w_conv.shape[3]
    w_conv2d = w_conv.reshape(9 * C, Cmid).astype(jnp.bfloat16)
    b_conv = params["b_conv"].reshape(1, Cmid).astype(jnp.float32)

    w_cls, b_cls = params["w_cls"], params["b_cls"]           # (Cmid, A), (A,)
    w_box, b_box = params["w_box"], params["b_box"]           # (Cmid,4A),(4A,)
    # reorder bbox columns a*4+c (PyTorch channel order) -> c*A+a
    w_box_c = jnp.transpose(w_box.reshape(Cmid, A, 4), (0, 2, 1))   # (Cmid,4,A)
    b_box_c = jnp.transpose(b_box.reshape(A, 4), (1, 0))            # (4, A)

    groups_w = [w_cls] + [w_box_c[:, c, :] for c in range(4)]
    groups_b = [b_cls] + [b_box_c[c] for c in range(4)]
    w_head = jnp.concatenate(
        [jnp.pad(w, ((0, 0), (0, G - A))) for w in groups_w], axis=1)  # (Cmid,5G)
    b_head = jnp.concatenate(
        [jnp.pad(b, (0, G - A)) for b in groups_b], axis=0)            # (5G,)
    w_head_t = jnp.transpose(w_head, (1, 0)).astype(jnp.float32)       # (5G,Cmid)
    b_head_t = b_head.reshape(5 * G, 1).astype(jnp.float32)
    return w_conv2d, b_conv, w_head_t, b_head_t


def rpn_head_decode_forward(feature_nchw, params, anchor_feats, im_w, im_h):
    """Fused RPNHead + sigmoid + BoxCoder.decode + clip (one Pallas kernel).

    feature_nchw: (N, C, H, W) float32 (PyTorch layout).
    anchor_feats: (4, A, H*W) f32 = [widths, heights, ctr_x, ctr_y].
    Returns probs (N, A, H*W) and boxes (N, 4, A, H*W), both f32.
    """
    N, C, H, W = feature_nchw.shape
    A = anchor_feats.shape[1]
    G = -(-A // 8) * 8                       # anchor group padded to sublanes
    Cmid = params["w_conv"].shape[3]

    w_conv2d, b_conv, w_head_t, b_head_t = _pack_head_weights(params, A, G)

    # Single layout pass: NCHW->NHWC transpose + 'same' pad + bf16 cast.
    xpad = jnp.pad(jnp.transpose(feature_nchw, (0, 2, 3, 1)),
                   ((0, 0), (1, 1), (1, 1), (0, 0))).astype(jnp.bfloat16)

    kernel = functools.partial(
        _rpn_fused_kernel, H=H, W=W, C=C, A=A, G=G,
        im_w=float(im_w), im_h=float(im_h),
        bbox_xform_clip=math.log(1000.0 / 16.0))

    probs, boxes = pl.pallas_call(
        kernel,
        out_shape=(
            jax.ShapeDtypeStruct((N, A, H * W), jnp.float32),
            jax.ShapeDtypeStruct((N, 4, A, H * W), jnp.float32),
        ),
        grid_spec=pltpu.PrefetchScalarGridSpec(
            num_scalar_prefetch=0,
            grid=(N,),
            in_specs=[
                pl.BlockSpec((1, H + 2, W + 2, C), lambda n: (n, 0, 0, 0)),
                pl.BlockSpec((9 * C, Cmid), lambda n: (0, 0)),
                pl.BlockSpec((1, Cmid), lambda n: (0, 0)),
                pl.BlockSpec((5 * G, Cmid), lambda n: (0, 0)),
                pl.BlockSpec((5 * G, 1), lambda n: (0, 0)),
                pl.BlockSpec((4, A, H * W), lambda n: (0, 0, 0)),
            ],
            out_specs=(
                pl.BlockSpec((1, A, H * W), lambda n: (n, 0, 0)),
                pl.BlockSpec((1, 4, A, H * W), lambda n: (n, 0, 0, 0)),
            ),
        ),
        compiler_params=pltpu.CompilerParams(
            dimension_semantics=("parallel",)),
    )(xpad, w_conv2d, b_conv, w_head_t, b_head_t, anchor_feats)
    return probs, boxes


# -----------------------------------------------------------------------------
# Plain-JAX glue: anchor generation (make_anchor_generator equivalent)
# -----------------------------------------------------------------------------
def generate_base_anchors(stride, sizes, aspect_ratios):
    """Classic py-faster-rcnn anchor enumeration."""
    base = jnp.array([0.0, 0.0, stride - 1.0, stride - 1.0])
    w = base[2] - base[0] + 1.0
    h = base[3] - base[1] + 1.0
    x_ctr = base[0] + 0.5 * (w - 1.0)
    y_ctr = base[1] + 0.5 * (h - 1.0)
    size = w * h
    ratios = jnp.array(aspect_ratios, jnp.float32)
    ws = jnp.round(jnp.sqrt(size / ratios))
    hs = jnp.round(ws * ratios)
    anchors = []
    for i in range(len(aspect_ratios)):
        for s in sizes:
            scale = s / stride
            sw = ws[i] * scale
            sh = hs[i] * scale
            anchors.append(jnp.stack([x_ctr - 0.5 * (sw - 1.0),
                                      y_ctr - 0.5 * (sh - 1.0),
                                      x_ctr + 0.5 * (sw - 1.0),
                                      y_ctr + 0.5 * (sh - 1.0)]))
    return jnp.stack(anchors, axis=0)  # (A, 4)


def anchor_decode_features(base_anchors, H, W, stride):
    """Per-anchor widths/heights/centers in the kernel's (coord, a, hw) layout."""
    shift_x = jnp.arange(W, dtype=jnp.float32) * stride
    shift_y = jnp.arange(H, dtype=jnp.float32) * stride
    sy, sx = jnp.meshgrid(shift_y, shift_x, indexing="ij")
    shifts = jnp.stack([sx.reshape(-1), sy.reshape(-1),
                        sx.reshape(-1), sy.reshape(-1)], axis=0)     # (4, H*W)
    anchors = base_anchors.T[:, :, None] + shifts[:, None, :]        # (4,A,HW)
    x1, y1, x2, y2 = anchors[0], anchors[1], anchors[2], anchors[3]
    widths = x2 - x1 + 1.0           # TO_REMOVE = 1
    heights = y2 - y1 + 1.0
    ctr_x = x1 + 0.5 * widths
    ctr_y = y1 + 0.5 * heights
    return jnp.stack([widths, heights, ctr_x, ctr_y], axis=0)        # (4,A,HW)


# -----------------------------------------------------------------------------
# RPNModule forward (inference / _forward_test path)
# -----------------------------------------------------------------------------
def rpn_module_forward(feature_nchw, params, image_size, stride,
                       anchor_sizes, aspect_ratios,
                       pre_nms_top_n=1000, post_nms_top_n=100):
    im_h, im_w = image_size
    N, C, H, W = feature_nchw.shape

    base = generate_base_anchors(stride, anchor_sizes, aspect_ratios)  # (A,4)
    A = base.shape[0]
    anchor_feats = anchor_decode_features(base, H, W, stride)          # (4,A,HW)

    # Fused head + decode + sigmoid + clip (Pallas).
    probs_nahw, boxes_n4ahw = rpn_head_decode_forward(
        feature_nchw, params, anchor_feats, im_w, im_h)

    # box_selector_test glue: per-image descending-objectness top-k.
    # (sigmoid is monotonic, so the ranking matches ranking on raw logits.)
    # TODO(synk): NMS + remove_small_boxes skipped (no clean Pallas equivalent).
    M = A * H * W
    probs = probs_nahw.reshape(N, M)
    boxes_n4m = boxes_n4ahw.reshape(N, 4, M)
    k = min(post_nms_top_n, min(pre_nms_top_n, M))
    top_scores, top_idx = jax.lax.top_k(probs, k)                     # desc
    top_boxes = jnp.take_along_axis(boxes_n4m, top_idx[:, None, :], axis=2)
    top_boxes = jnp.transpose(top_boxes, (0, 2, 1))                    # (N,k,4)

    boxes_out = [{"bbox": top_boxes[i], "objectness": top_scores[i],
                  "size": (im_w, im_h)} for i in range(N)]
    return boxes_out, {}


# -----------------------------------------------------------------------------
# Deterministic parameter init (RPNHead: conv3x3 + cls_logits + bbox_pred,
# weights ~ N(0, 0.01), biases = 0).
# -----------------------------------------------------------------------------
def init_params(key, in_channels, num_anchors):
    """Stored in matmul-friendly layouts:
       w_conv: (3, 3, Cin, Cout)      (PyTorch: (Cout, Cin, 3, 3))
       w_cls:  (Cmid, A)              (PyTorch: (A, Cmid, 1, 1))
       w_box:  (Cmid, 4A), columns ordered a*4+c like PyTorch's channels."""
    k1, k2, k3 = jax.random.split(key, 3)
    C, Cmid, A = in_channels, in_channels, num_anchors
    return {
        "w_conv": 0.01 * jax.random.normal(k1, (3, 3, C, Cmid), jnp.float32),
        "b_conv": jnp.zeros((Cmid,), jnp.float32),
        "w_cls": 0.01 * jax.random.normal(k2, (Cmid, A), jnp.float32),
        "b_cls": jnp.zeros((A,), jnp.float32),
        "w_box": 0.01 * jax.random.normal(k3, (Cmid, 4 * A), jnp.float32),
        "b_box": jnp.zeros((4 * A,), jnp.float32),
    }


if __name__ == "__main__":
    key = jax.random.PRNGKey(0)
    kx, kp = jax.random.split(key)

    # Small synthetic config: one FPN level.
    N, C, H, W = 2, 32, 16, 16
    stride = 16
    anchor_sizes = (64.0,)
    aspect_ratios = (0.5, 1.0, 2.0)
    num_anchors = len(anchor_sizes) * len(aspect_ratios)
    image_size = (H * stride, W * stride)  # (im_h, im_w)

    features = jax.random.normal(kx, (N, C, H, W), jnp.float32)  # NCHW input
    params = init_params(kp, C, num_anchors)

    boxes, losses = rpn_module_forward(
        features, params, image_size, stride, anchor_sizes, aspect_ratios)

    for b in boxes:
        jax.block_until_ready(b["bbox"])
        jax.block_until_ready(b["objectness"])
    assert losses == {}
    print("KERNEL_OK")
</pallas_src>

<mosaic_0001>
module attributes {stable_mosaic.version = 11 : i64} {
  func.func @_rpn_fused_kernel(%arg0: i32, %arg1: memref<1x18x18x32xbf16, #tpu.memory_space<vmem>>, %arg2: memref<288x32xbf16, #tpu.memory_space<vmem>>, %arg3: memref<1x32xf32, #tpu.memory_space<vmem>>, %arg4: memref<40x32xf32, #tpu.memory_space<vmem>>, %arg5: memref<40x1xf32, #tpu.memory_space<vmem>>, %arg6: memref<4x3x256xf32, #tpu.memory_space<vmem>>, %arg7: memref<1x3x256xf32, #tpu.memory_space<vmem>>, %arg8: memref<1x4x3x256xf32, #tpu.memory_space<vmem>>) attributes {dimension_semantics = [#tpu.dimension_semantics<parallel>], iteration_bounds = array<i64: 2>, scalar_prefetch = 0 : i64, scratch_operands = 0 : i64, tpu.core_type = #tpu.core_type<tc>, window_params = [{transform_indices = @transform_0, window_bounds = array<i64: 1, 18, 18, 32>}, {pipeline_mode = #tpu.pipeline_mode<synchronous>, transform_indices = @transform_1, window_bounds = array<i64: 288, 32>}, {pipeline_mode = #tpu.pipeline_mode<synchronous>, transform_indices = @transform_2, window_bounds = array<i64: 1, 32>}, {pipeline_mode = #tpu.pipeline_mode<synchronous>, transform_indices = @transform_3, window_bounds = array<i64: 40, 32>}, {pipeline_mode = #tpu.pipeline_mode<synchronous>, transform_indices = @transform_4, window_bounds = array<i64: 40, 1>}, {pipeline_mode = #tpu.pipeline_mode<synchronous>, transform_indices = @transform_5, window_bounds = array<i64: 4, 3, 256>}, {transform_indices = @transform_6, window_bounds = array<i64: 1, 3, 256>}, {transform_indices = @transform_7, window_bounds = array<i64: 1, 4, 3, 256>}]} {
    %c0 = arith.constant 0 : index
    %c0_0 = arith.constant 0 : index
    %c0_1 = arith.constant 0 : index
    %c0_2 = arith.constant 0 : index
    %0 = vector.load %arg1[%c0, %c0_0, %c0_1, %c0_2] : memref<1x18x18x32xbf16, #tpu.memory_space<vmem>>, vector<1x18x18x32xbf16>
    %1 = vector.shape_cast %0 : vector<1x18x18x32xbf16> to vector<18x18x32xbf16>
    %2 = arith.extf %1 : vector<18x18x32xbf16> to vector<18x18x32xf32>
    %3 = vector.extract_strided_slice %2 {offsets = [0, 0, 0], sizes = [16, 16, 32], strides = [1, 1, 1]} : vector<18x18x32xf32> to vector<16x16x32xf32>
    %4 = vector.shape_cast %3 : vector<16x16x32xf32> to vector<256x32xf32>
    %5 = vector.extract_strided_slice %2 {offsets = [0, 1, 0], sizes = [16, 16, 32], strides = [1, 1, 1]} : vector<18x18x32xf32> to vector<16x16x32xf32>
    %6 = vector.shape_cast %5 : vector<16x16x32xf32> to vector<256x32xf32>
    %7 = vector.extract_strided_slice %2 {offsets = [0, 2, 0], sizes = [16, 16, 32], strides = [1, 1, 1]} : vector<18x18x32xf32> to vector<16x16x32xf32>
    %8 = vector.shape_cast %7 : vector<16x16x32xf32> to vector<256x32xf32>
    %9 = vector.extract_strided_slice %2 {offsets = [1, 0, 0], sizes = [16, 16, 32], strides = [1, 1, 1]} : vector<18x18x32xf32> to vector<16x16x32xf32>
    %10 = vector.shape_cast %9 : vector<16x16x32xf32> to vector<256x32xf32>
    %11 = vector.extract_strided_slice %2 {offsets = [1, 1, 0], sizes = [16, 16, 32], strides = [1, 1, 1]} : vector<18x18x32xf32> to vector<16x16x32xf32>
    %12 = vector.shape_cast %11 : vector<16x16x32xf32> to vector<256x32xf32>
    %13 = vector.extract_strided_slice %2 {offsets = [1, 2, 0], sizes = [16, 16, 32], strides = [1, 1, 1]} : vector<18x18x32xf32> to vector<16x16x32xf32>
    %14 = vector.shape_cast %13 : vector<16x16x32xf32> to vector<256x32xf32>
    %15 = vector.extract_strided_slice %2 {offsets = [2, 0, 0], sizes = [16, 16, 32], strides = [1, 1, 1]} : vector<18x18x32xf32> to vector<16x16x32xf32>
    %16 = vector.shape_cast %15 : vector<16x16x32xf32> to vector<256x32xf32>
    %17 = vector.extract_strided_slice %2 {offsets = [2, 1, 0], sizes = [16, 16, 32], strides = [1, 1, 1]} : vector<18x18x32xf32> to vector<16x16x32xf32>
    %18 = vector.shape_cast %17 : vector<16x16x32xf32> to vector<256x32xf32>
    %19 = vector.extract_strided_slice %2 {offsets = [2, 2, 0], sizes = [16, 16, 32], strides = [1, 1, 1]} : vector<18x18x32xf32> to vector<16x16x32xf32>
    %20 = vector.shape_cast %19 : vector<16x16x32xf32> to vector<256x32xf32>
    %21 = tpu.concatenate %4, %6, %8, %10, %12, %14, %16, %18, %20 in 1 : vector<256x32xf32>, vector<256x32xf32>, vector<256x32xf32>, vector<256x32xf32>, vector<256x32xf32>, vector<256x32xf32>, vector<256x32xf32>, vector<256x32xf32>, vector<256x32xf32> -> vector<256x288xf32>
    %22 = arith.truncf %21 : vector<256x288xf32> to vector<256x288xbf16>
    %c0_3 = arith.constant 0 : index
    %c0_4 = arith.constant 0 : index
    %23 = vector.load %arg2[%c0_3, %c0_4] : memref<288x32xbf16, #tpu.memory_space<vmem>>, vector<288x32xbf16>
    %cst = arith.constant dense<0.000000e+00> : vector<256x32xf32>
    %24 = tpu.matmul %22, %23, %cst {dimension_numbers = #tpu.dot_dimension_numbers<[1], [0], [0], [1], [0, 0, 1, 1], [], []>} : vector<256x288xbf16>, vector<288x32xbf16>, vector<256x32xf32> -> vector<256x32xf32>
    %c0_5 = arith.constant 0 : index
    %c0_6 = arith.constant 0 : index
    %25 = vector.load %arg3[%c0_5, %c0_6] : memref<1x32xf32, #tpu.memory_space<vmem>>, vector<1x32xf32>
    %26 = vector.broadcast %25 : vector<1x32xf32> to vector<256x32xf32>
    %27 = arith.addf %24, %26 : vector<256x32xf32>
    %cst_7 = arith.constant 0.000000e+00 : f32
    %28 = vector.broadcast %cst_7 : f32 to vector<256x32xf32>
    %29 = arith.maximumf %27, %28 : vector<256x32xf32>
    %c0_8 = arith.constant 0 : index
    %c0_9 = arith.constant 0 : index
    %30 = vector.load %arg4[%c0_8, %c0_9] : memref<40x32xf32, #tpu.memory_space<vmem>>, vector<40x32xf32>
    %cst_10 = arith.constant dense<0.000000e+00> : vector<40x256xf32>
    %31 = tpu.matmul %30, %29, %cst_10 {dimension_numbers = #tpu.dot_dimension_numbers<[1], [1], [0], [0], [0, 0, 1, 0], [], []>} : vector<40x32xf32>, vector<256x32xf32>, vector<40x256xf32> -> vector<40x256xf32>
    %c0_11 = arith.constant 0 : index
    %c0_12 = arith.constant 0 : index
    %32 = vector.load %arg5[%c0_11, %c0_12] : memref<40x1xf32, #tpu.memory_space<vmem>>, vector<40x1xf32>
    %33 = vector.broadcast %32 : vector<40x1xf32> to vector<40x256xf32>
    %34 = arith.addf %31, %33 : vector<40x256xf32>
    %35 = vector.extract_strided_slice %34 {offsets = [0, 0], sizes = [3, 256], strides = [1, 1]} : vector<40x256xf32> to vector<3x256xf32>
    %36 = vector.extract_strided_slice %34 {offsets = [8, 0], sizes = [3, 256], strides = [1, 1]} : vector<40x256xf32> to vector<3x256xf32>
    %37 = vector.extract_strided_slice %34 {offsets = [16, 0], sizes = [3, 256], strides = [1, 1]} : vector<40x256xf32> to vector<3x256xf32>
    %38 = vector.extract_strided_slice %34 {offsets = [24, 0], sizes = [3, 256], strides = [1, 1]} : vector<40x256xf32> to vector<3x256xf32>
    %cst_13 = arith.constant 4.13516665 : f32
    %39 = vector.broadcast %cst_13 : f32 to vector<3x256xf32>
    %40 = arith.minimumf %38, %39 : vector<3x256xf32>
    %41 = vector.extract_strided_slice %34 {offsets = [32, 0], sizes = [3, 256], strides = [1, 1]} : vector<40x256xf32> to vector<3x256xf32>
    %cst_14 = arith.constant 4.13516665 : f32
    %42 = vector.broadcast %cst_14 : f32 to vector<3x256xf32>
    %43 = arith.minimumf %41, %42 : vector<3x256xf32>
    %c0_15 = arith.constant 0 : index
    %c0_16 = arith.constant 0 : index
    %c0_17 = arith.constant 0 : index
    %44 = vector.load %arg6[%c0_15, %c0_16, %c0_17] : memref<4x3x256xf32, #tpu.memory_space<vmem>>, vector<1x3x256xf32>
    %45 = vector.shape_cast %44 : vector<1x3x256xf32> to vector<3x256xf32>
    %c1 = arith.constant 1 : index
    %c0_18 = arith.constant 0 : index
    %c0_19 = arith.constant 0 : index
    %46 = vector.load %arg6[%c1, %c0_18, %c0_19] : memref<4x3x256xf32, #tpu.memory_space<vmem>>, vector<1x3x256xf32>
    %47 = vector.shape_cast %46 : vector<1x3x256xf32> to vector<3x256xf32>
    %c2 = arith.constant 2 : index
    %c0_20 = arith.constant 0 : index
    %c0_21 = arith.constant 0 : index
    %48 = vector.load %arg6[%c2, %c0_20, %c0_21] : memref<4x3x256xf32, #tpu.memory_space<vmem>>, vector<1x3x256xf32>
    %49 = vector.shape_cast %48 : vector<1x3x256xf32> to vector<3x256xf32>
    %c3 = arith.constant 3 : index
    %c0_22 = arith.constant 0 : index
    %c0_23 = arith.constant 0 : index
    %50 = vector.load %arg6[%c3, %c0_22, %c0_23] : memref<4x3x256xf32, #tpu.memory_space<vmem>>, vector<1x3x256xf32>
    %51 = vector.shape_cast %50 : vector<1x3x256xf32> to vector<3x256xf32>
    %52 = arith.mulf %36, %45 : vector<3x256xf32>
    %53 = arith.addf %52, %49 : vector<3x256xf32>
    %54 = arith.mulf %37, %47 : vector<3x256xf32>
    %55 = arith.addf %54, %51 : vector<3x256xf32>
    %56 = math.exp %40 : vector<3x256xf32>
    %57 = arith.mulf %56, %45 : vector<3x256xf32>
    %58 = math.exp %43 : vector<3x256xf32>
    %59 = arith.mulf %58, %47 : vector<3x256xf32>
    %cst_24 = arith.constant 5.000000e-01 : f32
    %60 = vector.broadcast %cst_24 : f32 to vector<3x256xf32>
    %61 = arith.mulf %60, %57 : vector<3x256xf32>
    %62 = arith.subf %53, %61 : vector<3x256xf32>
    %cst_25 = arith.constant 0.000000e+00 : f32
    %cst_26 = arith.constant 2.550000e+02 : f32
    %63 = vector.broadcast %cst_25 : f32 to vector<3x256xf32>
    %64 = arith.maximumf %63, %62 : vector<3x256xf32>
    %65 = vector.broadcast %cst_26 : f32 to vector<3x256xf32>
    %66 = arith.minimumf %65, %64 : vector<3x256xf32>
    %cst_27 = arith.constant 5.000000e-01 : f32
    %67 = vector.broadcast %cst_27 : f32 to vector<3x256xf32>
    %68 = arith.mulf %67, %59 : vector<3x256xf32>
    %69 = arith.subf %55, %68 : vector<3x256xf32>
    %cst_28 = arith.constant 0.000000e+00 : f32
    %cst_29 = arith.constant 2.550000e+02 : f32
    %70 = vector.broadcast %cst_28 : f32 to vector<3x256xf32>
    %71 = arith.maximumf %70, %69 : vector<3x256xf32>
    %72 = vector.broadcast %cst_29 : f32 to vector<3x256xf32>
    %73 = arith.minimumf %72, %71 : vector<3x256xf32>
    %cst_30 = arith.constant 5.000000e-01 : f32
    %74 = vector.broadcast %cst_30 : f32 to vector<3x256xf32>
    %75 = arith.mulf %74, %57 : vector<3x256xf32>
    %76 = arith.addf %53, %75 : vector<3x256xf32>
    %cst_31 = arith.constant 1.000000e+00 : f32
    %77 = vector.broadcast %cst_31 : f32 to vector<3x256xf32>
    %78 = arith.subf %76, %77 : vector<3x256xf32>
    %cst_32 = arith.constant 0.000000e+00 : f32
    %cst_33 = arith.constant 2.550000e+02 : f32
    %79 = vector.broadcast %cst_32 : f32 to vector<3x256xf32>
    %80 = arith.maximumf %79, %78 : vector<3x256xf32>
    %81 = vector.broadcast %cst_33 : f32 to vector<3x256xf32>
    %82 = arith.minimumf %81, %80 : vector<3x256xf32>
    %cst_34 = arith.constant 5.000000e-01 : f32
    %83 = vector.broadcast %cst_34 : f32 to vector<3x256xf32>
    %84 = arith.mulf %83, %59 : vector<3x256xf32>
    %85 = arith.addf %55, %84 : vector<3x256xf32>
    %cst_35 = arith.constant 1.000000e+00 : f32
    %86 = vector.broadcast %cst_35 : f32 to vector<3x256xf32>
    %87 = arith.subf %85, %86 : vector<3x256xf32>
    %cst_36 = arith.constant 0.000000e+00 : f32
    %cst_37 = arith.constant 2.550000e+02 : f32
    %88 = vector.broadcast %cst_36 : f32 to vector<3x256xf32>
    %89 = arith.maximumf %88, %87 : vector<3x256xf32>
    %90 = vector.broadcast %cst_37 : f32 to vector<3x256xf32>
    %91 = arith.minimumf %90, %89 : vector<3x256xf32>
    %92 = arith.negf %35 : vector<3x256xf32>
    %93 = math.exp %92 : vector<3x256xf32>
    %cst_38 = arith.constant 1.000000e+00 : f32
    %94 = vector.broadcast %cst_38 : f32 to vector<3x256xf32>
    %95 = arith.addf %94, %93 : vector<3x256xf32>
    %96 = arith.divf %94, %95 : vector<3x256xf32>
    %c0_39 = arith.constant 0 : index
    %c0_40 = arith.constant 0 : index
    %c0_41 = arith.constant 0 : index
    %97 = vector.load %arg7[%c0_39, %c0_40, %c0_41] : memref<1x3x256xf32, #tpu.memory_space<vmem>>, vector<1x3x256xf32>
    %98 = vector.shape_cast %97 : vector<1x3x256xf32> to vector<3x256xf32>
    %99 = vector.shape_cast %96 : vector<3x256xf32> to vector<1x3x256xf32>
    tpu.vector_store %arg7[%c0_39, %c0_40, %c0_41], %99 {strides = array<i32>} : memref<1x3x256xf32, #tpu.memory_space<vmem>>, vector<1x3x256xf32>,
    %c0_42 = arith.constant 0 : index
    %c0_43 = arith.constant 0 : index
    %c0_44 = arith.constant 0 : index
    %c0_45 = arith.constant 0 : index
    %100 = vector.load %arg8[%c0_42, %c0_43, %c0_44, %c0_45] : memref<1x4x3x256xf32, #tpu.memory_space<vmem>>, vector<1x1x3x256xf32>
    %101 = vector.shape_cast %100 : vector<1x1x3x256xf32> to vector<3x256xf32>
    %102 = vector.shape_cast %66 : vector<3x256xf32> to vector<1x1x3x256xf32>
    tpu.vector_store %arg8[%c0_42, %c0_43, %c0_44, %c0_45], %102 {strides = array<i32>} : memref<1x4x3x256xf32, #tpu.memory_space<vmem>>, vector<1x1x3x256xf32>,
    %c0_46 = arith.constant 0 : index
    %c1_47 = arith.constant 1 : index
    %c0_48 = arith.constant 0 : index
    %c0_49 = arith.constant 0 : index
    %103 = vector.load %arg8[%c0_46, %c1_47, %c0_48, %c0_49] : memref<1x4x3x256xf32, #tpu.memory_space<vmem>>, vector<1x1x3x256xf32>
    %104 = vector.shape_cast %103 : vector<1x1x3x256xf32> to vector<3x256xf32>
    %105 = vector.shape_cast %73 : vector<3x256xf32> to vector<1x1x3x256xf32>
    tpu.vector_store %arg8[%c0_46, %c1_47, %c0_48, %c0_49], %105 {strides = array<i32>} : memref<1x4x3x256xf32, #tpu.memory_space<vmem>>, vector<1x1x3x256xf32>,
    %c0_50 = arith.constant 0 : index
    %c2_51 = arith.constant 2 : index
    %c0_52 = arith.constant 0 : index
    %c0_53 = arith.constant 0 : index
    %106 = vector.load %arg8[%c0_50, %c2_51, %c0_52, %c0_53] : memref<1x4x3x256xf32, #tpu.memory_space<vmem>>, vector<1x1x3x256xf32>
    %107 = vector.shape_cast %106 : vector<1x1x3x256xf32> to vector<3x256xf32>
    %108 = vector.shape_cast %82 : vector<3x256xf32> to vector<1x1x3x256xf32>
    tpu.vector_store %arg8[%c0_50, %c2_51, %c0_52, %c0_53], %108 {strides = array<i32>} : memref<1x4x3x256xf32, #tpu.memory_space<vmem>>, vector<1x1x3x256xf32>,
    %c0_54 = arith.constant 0 : index
    %c3_55 = arith.constant 3 : index
    %c0_56 = arith.constant 0 : index
    %c0_57 = arith.constant 0 : index
    %109 = vector.load %arg8[%c0_54, %c3_55, %c0_56, %c0_57] : memref<1x4x3x256xf32, #tpu.memory_space<vmem>>, vector<1x1x3x256xf32>
    %110 = vector.shape_cast %109 : vector<1x1x3x256xf32> to vector<3x256xf32>
    %111 = vector.shape_cast %91 : vector<3x256xf32> to vector<1x1x3x256xf32>
    tpu.vector_store %arg8[%c0_54, %c3_55, %c0_56, %c0_57], %111 {strides = array<i32>} : memref<1x4x3x256xf32, #tpu.memory_space<vmem>>, vector<1x1x3x256xf32>,
    return
  }
  func.func @transform_0(%arg0: i32) -> (i32, i32, i32, i32) {
    %c0_i32 = arith.constant 0 : i32
    %c0_i32_0 = arith.constant 0 : i32
    %c0_i32_1 = arith.constant 0 : i32
    %c0_i32_2 = arith.constant 0 : i32
    return %arg0, %c0_i32, %c0_i32_0, %c0_i32_1 : i32, i32, i32, i32
  }
  func.func @transform_1(%arg0: i32) -> (i32, i32) {
    %c0_i32 = arith.constant 0 : i32
    %c0_i32_0 = arith.constant 0 : i32
    %c0_i32_1 = arith.constant 0 : i32
    return %c0_i32, %c0_i32_0 : i32, i32
  }
  func.func @transform_2(%arg0: i32) -> (i32, i32) {
    %c0_i32 = arith.constant 0 : i32
    %c0_i32_0 = arith.constant 0 : i32
    %c0_i32_1 = arith.constant 0 : i32
    return %c0_i32, %c0_i32_0 : i32, i32
  }
  func.func @transform_3(%arg0: i32) -> (i32, i32) {
    %c0_i32 = arith.constant 0 : i32
    %c0_i32_0 = arith.constant 0 : i32
    %c0_i32_1 = arith.constant 0 : i32
    return %c0_i32, %c0_i32_0 : i32, i32
  }
  func.func @transform_4(%arg0: i32) -> (i32, i32) {
    %c0_i32 = arith.constant 0 : i32
    %c0_i32_0 = arith.constant 0 : i32
    %c0_i32_1 = arith.constant 0 : i32
    return %c0_i32, %c0_i32_0 : i32, i32
  }
  func.func @transform_5(%arg0: i32) -> (i32, i32, i32) {
    %c0_i32 = arith.constant 0 : i32
    %c0_i32_0 = arith.constant 0 : i32
    %c0_i32_1 = arith.constant 0 : i32
    %c0_i32_2 = arith.constant 0 : i32
    return %c0_i32, %c0_i32_0, %c0_i32_1 : i32, i32, i32
  }
  func.func @transform_6(%arg0: i32) -> (i32, i32, i32) {
    %c0_i32 = arith.constant 0 : i32
    %c0_i32_0 = arith.constant 0 : i32
    %c0_i32_1 = arith.constant 0 : i32
    return %arg0, %c0_i32, %c0_i32_0 : i32, i32, i32
  }
  func.func @transform_7(%arg0: i32) -> (i32, i32, i32, i32) {
    %c0_i32 = arith.constant 0 : i32
    %c0_i32_0 = arith.constant 0 : i32
    %c0_i32_1 = arith.constant 0 : i32
    %c0_i32_2 = arith.constant 0 : i32
    return %arg0, %c0_i32, %c0_i32_0, %c0_i32_1 : i32, i32, i32, i32
  }
}

</mosaic_0001>

<bundles_post_ra>
// kernel: tpu_custom_call.1
= control target key start
LH: loop header
LB: loop body
LE: loop exit
PB: predicated region body
PF: predicated region fallthrough
CT: control target
= control target key end

     0   :  { %s3516_s24 = smov 0   ;;  %s4868_s0 = inlined_call_operand.vmem [shape: bf16[2,18,18,32], index: 0, kind: input, shape index: {}]   ;;  %s4869_s1 = inlined_call_operand.vmem [shape: bf16[288,32], index: 1, kind: input, shape index: {}]   ;;  %s4870_s2 = inlined_call_operand.vmem [shape: f32[1,32], index: 2, kind: input, shape index: {}]   ;;  %s4871_s3 = inlined_call_operand.vmem [shape: f32[40,32], index: 3, kind: input, shape index: {}]   ;;  %s4872_s4 = inlined_call_operand.vmem [shape: f32[40,1], index: 4, kind: input, shape index: {}]   ;;  %s4873_s5 = inlined_call_operand.vmem [shape: f32[4,3,256], index: 5, kind: input, shape index: {}]   ;;  %s4874_s6 = inlined_call_operand.vmem [shape: f32[2,3,256], index: 6, kind: output, shape index: {0}]   ;;  %s4875_s7 = inlined_call_operand.vmem [shape: f32[2,4,3,256], index: 7, kind: output, shape index: {1}]  }
   0x1 LB: > { %s2517_s25 = sadd.s32 4294967295, %s3470_s24   ;;  %p2521_p0 = scmp.ge.s32.totalorder %s3470_s24, 1  ;;  %s3470_s24 = sphi %s3516_s24, %s18_s24  }
   0x2   : > { %p240_p1 = scmp.lt.s32.totalorder %s3470_s24, 3 }
   0x4   : > { %p241_p2 = pnand %p2521_p0, %p240_p1 }
   0x6   : > { %244 = sbr.rel (%p241_p2) target bundleno = 847 (0x34f), region = 44 }
   0xd   : > { %p277_p3 = scmp.lt.s32.totalorder %s2517_s25, 1  ;;  %v3426_v0 = vld [vmem:[%s4869_s1 + $0x40] sm:$0xff]   ;;  %v3428_v2 = vld [vmem:[%s4869_s1 + $0x48] sm:$0xff]   ;;  %v3430_v4 = vld [vmem:[%s4869_s1 + $0x50] sm:$0xff]   ;;  %vm530_vm0 = vcmask 1045504   ;;  %vm449_vm1 = vcmask 1046528  }
   0xe   : > { %v3427_v1 = vld [vmem:[%s4869_s1] sm:$0xff]   ;;  %2659 = vmatprep.subr.bf16.mxu0 %v3426_v0  ;;  %2915 = vmatprep.subr.bf16.mxu1 %v3426_v0  ;;  %v3429_v3 = vld [vmem:[%s4869_s1 + $0x8] sm:$0xff]   ;;  %v3431_v14 = vld [vmem:[%s4869_s1 + $0x10] sm:$0xff]   ;;  %s3472_s19 = smov 64   ;;  %s3473_s20 = smov 32   ;;  %vm1277_vm2 = vcmask 261120  }
   0xf   : > { %s5080_s25 = smov (!%p277_p3, %s2517_s25), 1  ;;  %2660 = vmatpush3.bf16.msra.mxu0 %v3427_v1  ;;  %2923 = vmatpush3.bf16.msra.mxu1 %v3427_v1  ;;  %s3474_s21 = smov 96   ;;  %v3432_v56 = vld [vmem:[%s4869_s1 + $0x58] sm:$0xff]   ;;  %v3434_v63 = vld [vmem:[%s4869_s1 + $0x60] sm:$0xff]   ;;  %vm1310_vm3 = vcmask 523264   ;;  %vm1343_vm4 = vcmask 785408   ;;  %vm4753_vm5 = vmpackc.low %vm1277_vm2, %vm1277_vm2 }
  0x10   : > { %s2931_s9 = smul.u32 216, %s5080_s25  ;;  %2661 = vmatprep.subr.bf16.mxu0 %v3428_v2  ;;  %2916 = vmatprep.subr.bf16.mxu1 %v3428_v2  ;;  %v3433_v58 = vld [vmem:[%s4869_s1 + $0x18] sm:$0xff]   ;;  %s2613_s30 = sshll.u32 %s5080_s25, 3 }
  0x11   : > { %s286_s14 = scalar_lea.vmem %s4874_s6, %s2613_s30  ;;  %s2614_s18 = sshll.u32 %s5080_s25, 5 }
  0x12   : > { %s3545_s16 = scalar_lea.vmem %s4868_s0, %s2931_s9  ;;  %s291_s26 = scalar_lea.vmem %s4875_s7, %s2614_s18 }
  0x13   : > { %v2651_v5 = vld [vmem:[%s3545_s16 + $0x18] sm:$0xff]   ;;  %v296_v6 = vld [vmem:[%s3545_s16 + $0xc] sm:$0xff]   ;;  %v298_v7 = vld [vmem:[%s3545_s16 + $0x14] sm:$0x1]  ;;  %2662 = vmatpush3.bf16.msra.mxu0 %v3429_v3  ;;  %2924 = vmatpush3.bf16.msra.mxu1 %v3429_v3 }
  0x14   : > { %v3550_v8 = vunpack.c.l.bf16 %v2651_v5  ;;  %v3552_v9 = vunpack.c.h.bf16 %v2651_v5  ;;  %v3554_v10 = vunpack.c.l.bf16 %v296_v6  ;;  %v3556_v11 = vunpack.c.h.bf16 %v296_v6  ;;  %v2616_v12 = vld [vmem:[%s3545_s16] sm:$0xff]   ;;  %v295_v13 = vld [vmem:[%s3545_s16 + $0x8] sm:$0x1]  ;;  %2663 = vmatprep.subr.bf16.mxu0 %v3430_v4  ;;  %2917 = vmatprep.subr.bf16.mxu1 %v3430_v4  ;;  %v304_v52 = vld [vmem:[%s3545_s16 + $0x2c] sm:$0x1] }
  0x15   : > { %v352_v15 = vunpack.c.l.bf16 %v298_v7  ;;  %v3563_v16 = vunpack.c.l.bf16 %v2616_v12  ;;  %v3565_v17 = vunpack.c.h.bf16 %v2616_v12  ;;  %v349_v18 = vunpack.c.l.bf16 %v295_v13  ;;  %v301_v23 = vld [vmem:[%s3545_s16 + $0x20] sm:$0x1]  ;;  %v302_v47 = vld [vmem:[%s3545_s16 + $0x24] sm:$0xff]  }
  0x16   : > { %v3569_v19 = vpack.i.bf16 %v3552_v9, %v3550_v8  ;;  %v536_v20 = vrot.slane %v3554_v10, 2  ;;  %v537_v21 = vrot.slane %v3556_v11, 2  ;;  %v2949_v22 = vpack.i.bf16 %v3556_v11, %v3554_v10  ;;  %v3435_v5 = vld [vmem:[%s4869_s1 + $0x20] sm:$0xff]   ;;  %v3436_v6 = vld [vmem:[%s4869_s1 + $0x68] sm:$0xff]  }
  0x17   : > { %v539_v24 = vrot.slane %v352_v15, 2  ;;  %v450_v25 = vrot.slane %v3563_v16, 1  ;;  %v451_v26 = vrot.slane %v3565_v17, 1  ;;  %v453_v27 = vrot.slane %v349_v18, 1  ;;  %2664 = vmatpush3.bf16.msra.mxu0 %v3431_v14  ;;  %2925 = vmatpush3.bf16.msra.mxu1 %v3431_v14 }
  0x18   : > { %2945 = vrot.lane.b32.xlu1 %v3569_v19, %s3472_s19  ;;  %v538_v28 = vsel %vm530_vm0, %v536_v20, %v537_v21  ;;  %v531_v29 = vrot.slane %v3563_v16, 2  ;;  %v532_v30 = vrot.slane %v3565_v17, 2  ;;  %v534_v31 = vrot.slane %v349_v18, 2  ;;  %2665 = vmatprep.subr.bf16.mxu0 %v3432_v56 }
  0x19   : > { %v540_v32 = vsel %vm530_vm0, %v537_v21, %v539_v24  ;;  %v452_v33 = vsel %vm449_vm1, %v450_v25, %v451_v26  ;;  %v454_v34 = vsel %vm449_vm1, %v451_v26, %v453_v27  ;;  %v355_v35 = vunpack.c.l.bf16 %v301_v23  ;;  %2918 = vmatprep.subr.bf16.mxu1 %v3432_v56  ;;  %v2652_v21 = vld [vmem:[%s3545_s16 + $0x30] sm:$0xff]   ;;  %v3670_v23 = vld [vmem:[%s3545_s16 + $0x38] sm:$0x1]  ;;  %v343_v56 = vld [vmem:[%s3545_s16 + $0xc8] sm:$0x1] }
  0x1a   : > { %v3586_v36 = vpack.i.bf16 %v540_v32, %v538_v28  ;;  %v2959_v37 = vpack.i.bf16 %v454_v34, %v452_v33  ;;  %v533_v38 = vsel %vm530_vm0, %v531_v29, %v532_v30  ;;  %v535_v39 = vsel %vm530_vm0, %v532_v30, %v534_v31  ;;  %v3438_v24 = vld [vmem:[%s4869_s1 + $0x70] sm:$0xff]   ;;  %v2657_v29 = vld [vmem:[%s3545_s16 + $0xa8] sm:$0xff]  }
  0x1b   : > { %v460_v40 = vrot.slane %v3550_v8, 1  ;;  %v461_v41 = vrot.slane %v3552_v9, 1  ;;  %v463_v42 = vrot.slane %v355_v35, 1  ;;  %v2964_v43 = vpack.i.bf16 %v535_v39, %v533_v38  ;;  %2666 = vmatpush3.bf16.msra.mxu0 %v3433_v58  ;;  %2926 = vmatpush3.bf16.msra.mxu1 %v3433_v58  ;;  %v337_v30 = vld [vmem:[%s3545_s16 + $0xb0] sm:$0x1]  ;;  %v338_v34 = vld [vmem:[%s3545_s16 + $0xb4] sm:$0xff]  }
  0x1c   : > { %2955 = vrot.lane.b32.xlu0 %v3586_v36, %s3473_s20  ;;  %2950 = vrot.lane.b32.xlu1 %v2949_v22, %s3474_s21  ;;  %v455_v44 = vrot.slane %v3554_v10, 1  ;;  %v456_v45 = vrot.slane %v3556_v11, 1  ;;  %v458_v46 = vrot.slane %v352_v15, 1  ;;  %v541_v50 = vrot.slane %v3550_v8, 2  ;;  %v3437_v22 = vld [vmem:[%s4869_s1 + $0x28] sm:$0xff]   ;;  %v3439_v33 = vld [vmem:[%s4869_s1 + $0x30] sm:$0xff]  }
  0x1d   : > { %v3599_v48 = vsel %vm449_vm1, %v460_v40, %v461_v41  ;;  %v3602_v49 = vsel %vm449_vm1, %v461_v41, %v463_v42  ;;  %v542_v51 = vrot.slane %v3552_v9, 2  ;;  %v544_v55 = vrot.slane %v355_v35, 2  ;;  %2667 = vmatprep.subr.bf16.mxu0 %v3434_v63  ;;  %2919 = vmatprep.subr.bf16.mxu1 %v3434_v63  ;;  %v3440_v35 = vld [vmem:[%s4869_s1 + $0x78] sm:$0xff]  }
  0x1e   : > { %v3608_v53 = vsel %vm449_vm1, %v455_v44, %v456_v45  ;;  %v3611_v54 = vsel %vm449_vm1, %v456_v45, %v458_v46  ;;  %v3618_v57 = vpack.i.bf16 %v3602_v49, %v3599_v48  ;;  %v3627_v60 = vunpack.c.l.bf16 %v302_v47  ;;  %v3716_v40 = vld [vmem:[%s3545_s16 + $0xbc] sm:$0x1] }
  0x1f   : > { %v2984_v59 = vpack.i.bf16 %v3611_v54, %v3608_v53  ;;  %v3629_v61 = vunpack.c.h.bf16 %v302_v47  ;;  %v358_v62 = vunpack.c.l.bf16 %v304_v52  ;;  %v3635_v0 = vsel %vm530_vm0, %v541_v50, %v542_v51  ;;  %2668 = vmatpush3.bf16.msra.mxu0 %v3435_v5  ;;  %2927 = vmatpush3.bf16.msra.mxu1 %v3435_v5  ;;  %v3441_v45 = vld [vmem:[%s4869_s1 + $0x38] sm:$0xff]  }
  0x20   : > { %2960 = vrot.lane.b32.xlu0 %v2959_v37, %s3473_s20  ;;  %2965 = vrot.lane.b32.xlu1 %v2964_v43, %s3472_s19  ;;  %4939 = vst [vmem:[#allocation2_spill] sm:$0xff] %v3635_v0  ;;  %v3638_v1 = vsel %vm530_vm0, %v542_v51, %v544_v55  ;;  %v546_v2 = vrot.slane %v3627_v60, 2  ;;  %v465_v12 = vrot.slane %v3627_v60, 1  ;;  %v3689_v28 = vunpack.c.l.bf16 %v2652_v21  ;;  %v2658_v55 = vld [vmem:[%s3545_s16 + $0xc0] sm:$0xff]  }
  0x21   : > { %4940 = vst [vmem:[#allocation3_spill] sm:$0xff] %v3638_v1  ;;  %v547_v3 = vrot.slane %v3629_v61, 2  ;;  %v549_v4 = vrot.slane %v358_v62, 2  ;;  %v3653_v7 = vpack.i.bf16 %v3638_v1, %v3635_v0  ;;  %v466_v15 = vrot.slane %v3629_v61, 1  ;;  %2669 = vmatprep.subr.bf16.mxu0 %v3436_v6  ;;  %2920 = vmatprep.subr.bf16.mxu1 %v3436_v6 }
  0x22   : > { %v468_v18 = vrot.slane %v358_v62, 1  ;;  %v3681_v25 = vpack.i.bf16 %v3629_v61, %v3627_v60  ;;  %4943 = vst [vmem:[#allocation6_spill] sm:$0xff] %v3689_v28  ;;  %v3693_v31 = vunpack.c.h.bf16 %v2652_v21  ;;  %v361_v32 = vunpack.c.l.bf16 %v3670_v23 }
  0x23   : > { %v3657_v13 = vsel %vm530_vm0, %v546_v2, %v547_v3  ;;  %v3660_v14 = vsel %vm530_vm0, %v547_v3, %v549_v4  ;;  %v3684_v26 = vsel %vm449_vm1, %v465_v12, %v466_v15  ;;  %2670 = vmatpush3.bf16.msra.mxu0 %v3437_v22  ;;  %2928 = vmatpush3.bf16.msra.mxu1 %v3437_v22  ;;  %v3711_v37 = vunpack.c.l.bf16 %v2657_v29 }
  0x24   : > { %2970 = vrot.lane.b32.xlu0 %v3618_v57, %s3474_s21  ;;  %2985 = vrot.lane.b32.xlu1 %v2984_v59, %s3473_s20  ;;  %4941 = vst [vmem:[#allocation4_spill] sm:$0xff] %v3657_v13  ;;  %4942 = vst [vmem:[#allocation5_spill] sm:$0xff] %v3660_v14  ;;  %v3687_v27 = vsel %vm449_vm1, %v466_v15, %v468_v18  ;;  %v3713_v38 = vunpack.c.h.bf16 %v2657_v29  ;;  %v391_v39 = vunpack.c.l.bf16 %v337_v30  ;;  %v470_v41 = vrot.slane %v3689_v28, 1 }
  0x25   : > { %4944 = vst [vmem:[#allocation7_spill] sm:$0xff] %v3693_v31  ;;  %2671 = vmatprep.subr.bf16.mxu0 %v3438_v24  ;;  %2921 = vmatprep.subr.bf16.mxu1 %v3438_v24  ;;  %v471_v42 = vrot.slane %v3693_v31, 1  ;;  %v473_v43 = vrot.slane %v361_v32, 1  ;;  %v3724_v44 = vunpack.c.h.bf16 %v338_v34  ;;  %v394_v46 = vunpack.c.l.bf16 %v3716_v40 }
  0x26   : > { %v3736_v47 = vpack.i.bf16 %v3660_v14, %v3657_v13  ;;  %v520_v50 = vrot.slane %v3711_v37, 1  ;;  %v521_v51 = vrot.slane %v3713_v38, 1  ;;  %v523_v52 = vrot.slane %v391_v39, 1  ;;  %v4040_v13 = vld [vmem:[%s3545_s16 + $0x8c] sm:$0x1] }
  0x27   : > { %4946 = vst [vmem:[#allocation9_spill] sm:$0xff] %v3724_v44  ;;  %2672 = vmatpush3.bf16.msra.mxu0 %v3439_v33  ;;  %2929 = vmatpush3.bf16.msra.mxu1 %v3439_v33  ;;  %v3744_v58 = vpack.i.bf16 %v3693_v31, %v3689_v28  ;;  %v3747_v59 = vsel %vm449_vm1, %v470_v41, %v471_v42  ;;  %v607_v63 = vrot.slane %v3724_v44, 2  ;;  %v609_v2 = vrot.slane %v394_v46, 2 }
  0x28   : > { %2975 = vrot.lane.b32.xlu0 %v3653_v7, %s3473_s20  ;;  %2990 = vrot.lane.b32.xlu1 %v3586_v36, %s3472_s19  ;;  %v3709_v36 = vpack.i.bf16 %v3687_v27, %v3684_v26  ;;  %v2649_v3 = vunpack.c.l.bf16 %v2658_v55  ;;  %v2650_v4 = vunpack.c.h.bf16 %v2658_v55  ;;  %v397_v5 = vunpack.c.l.bf16 %v343_v56 }
  0x29   : > { %2673 = vmatprep.subr.bf16.mxu0 %v3440_v35  ;;  %2922 = vmatprep.subr.bf16.mxu1 %v3440_v35  ;;  %v3761_v6 = vsel %vm449_vm1, %v520_v50, %v521_v51  ;;  %v3764_v12 = vsel %vm449_vm1, %v521_v51, %v523_v52  ;;  %v601_v15 = vrot.slane %v3711_v37, 2  ;;  %v602_v18 = vrot.slane %v3713_v38, 2  ;;  %v3874_v35 = vld [vmem:[%s3545_s16 + $0xd4] sm:$0x1] }
  0x2a   : > { %4947 = vst [vmem:[#allocation10_spill] sm:$0xff] %v3761_v6  ;;  %4948 = vst [vmem:[#allocation11_spill] sm:$0xff] %v3764_v12  ;;  %v604_v21 = vrot.slane %v391_v39, 2  ;;  %v651_v22 = vrot.slane %v2649_v3, 2  ;;  %v652_v24 = vrot.slane %v2650_v4, 2  ;;  %v654_v29 = vrot.slane %v397_v5, 2 }
  0x2b   : > { %2674 = vmatpush3.bf16.msra.mxu0 %v3441_v45  ;;  %2930 = vmatpush3.bf16.msra.mxu1 %v3441_v45  ;;  %v3792_v41 = vsel %vm530_vm0, %v607_v63, %v609_v2  ;;  %v614_v50 = vrot.slane %v2649_v3, 1  ;;  %v615_v51 = vrot.slane %v2650_v4, 1  ;;  %v617_v52 = vrot.slane %v397_v5, 1  ;;  %4966 = vst [vmem:[#allocation29_spill] sm:$0xff] %v3874_v35 }
  0x2c   : > { %2980 = vrot.lane.b32.xlu0 %v3681_v25, %s3472_s19  ;;  %3000 = vrot.lane.b32.xlu1 %v3569_v19, %s3474_s21  ;;  %v3722_v19 = vunpack.c.l.bf16 %v338_v34  ;;  %v3769_v30 = vsel %vm530_vm0, %v651_v22, %v652_v24  ;;  %v3772_v33 = vsel %vm530_vm0, %v652_v24, %v654_v29  ;;  %v3784_v34 = vpack.i.bf16 %v3764_v12, %v3761_v6 }
  0x2d   : > { %4949 = vst [vmem:[#allocation12_spill] sm:$0xff] %v3769_v30  ;;  %4950 = vst [vmem:[#allocation13_spill] sm:$0xff] %v3772_v33  ;;  %v3044_v55 = vpack.i.bf16 %v2650_v4, %v2649_v3  ;;  %v3822_v2 = vsel %vm449_vm1, %v615_v51, %v617_v52  ;;  %v552_v5 = vrot.slane %v3693_v31, 2 }
  0x2e   : > { %4945 = vst [vmem:[#allocation8_spill] sm:$0xff] %v3722_v19  ;;  %v606_v62 = vrot.slane %v3722_v19, 2  ;;  %4951 = vst [vmem:[#allocation14_spill] sm:$0xff] %v3784_v34  ;;  %v3815_v56 = vpack.i.bf16 %v3724_v44, %v3722_v19 }
  0x2f   : > { %4953 = vst [vmem:[#allocation16_spill] sm:$0xff] %v3792_v41  ;;  %4959 = vst [vmem:[#allocation22_spill] sm:$0xff] %v3822_v2 }
  0x30   : > { %2995 = vrot.lane.b32.xlu0 %v3709_v36, %s3474_s21  ;;  %3010 = vrot.lane.b32.xlu1 %v3618_v57, %s3473_s20  ;;  %v3750_v57 = vsel %vm449_vm1, %v471_v42, %v473_v43  ;;  %v3789_v39 = vsel %vm530_vm0, %v606_v62, %v607_v63  ;;  %v3795_v42 = vsel %vm530_vm0, %v601_v15, %v602_v18  ;;  %v551_v62 = vrot.slane %v3689_v28, 2  ;;  %v4085_v28 = vld [vmem:[%s3545_s16 + $0x98] sm:$0x1] }
  0x31   : > { %4952 = vst [vmem:[#allocation15_spill] sm:$0xff] %v3789_v39  ;;  %4954 = vst [vmem:[#allocation17_spill] sm:$0xff] %v3795_v42  ;;  %v3034_v43 = vpack.i.bf16 %v3792_v41, %v3789_v39  ;;  %v3819_v63 = vsel %vm449_vm1, %v614_v50, %v615_v51  ;;  %v554_v15 = vrot.slane %v361_v32, 2 }
  0x32   : > { %4957 = vst [vmem:[#allocation20_spill] sm:$0xff] %v3815_v56  ;;  %4958 = vst [vmem:[#allocation21_spill] sm:$0xff] %v3819_v63  ;;  %v3054_v3 = vpack.i.bf16 %v3822_v2, %v3819_v63  ;;  %v3839_v24 = vsel %vm530_vm0, %v551_v62, %v552_v5  ;;  %v525_v62 = vrot.slane %v3722_v19, 1 }
  0x33   : > { %4962 = vst [vmem:[#allocation25_spill] sm:$0xff] %v3839_v24  ;;  %v3842_v23 = vsel %vm530_vm0, %v552_v5, %v554_v15  ;;  %v526_v5 = vrot.slane %v3724_v44, 1  ;;  %v528_v15 = vrot.slane %v394_v46, 1  ;;  %v344_v46 = vld [vmem:[%s3545_s16 + $0xcc] sm:$0xff]  }
  0x34   : > { %3005 = vrot.lane.b32.xlu0 %v3736_v47, %s3473_s20  ;;  %3020 = vrot.lane.b32.xlu1 %v3653_v7, %s3472_s19  ;;  %v3780_v7 = vpack.i.bf16 %v3750_v57, %v3747_v59  ;;  %4963 = vst [vmem:[#allocation26_spill] sm:$0xff] %v3842_v23  ;;  %v3064_v29 = vpack.i.bf16 %v3842_v23, %v3839_v24  ;;  %v326_v23 = vld [vmem:[%s3545_s16 + $0x84] sm:$0xff]  }
  0x35   : > { %v3870_v40 = vsel %vm449_vm1, %v526_v5, %v528_v15 }
  0x38   : > { %3015 = vrot.lane.b32.xlu0 %v3744_v58, %s3472_s19  ;;  %3030 = vrot.lane.b32.xlu1 %v3681_v25, %s3474_s21  ;;  %v3798_v25 = vsel %vm530_vm0, %v602_v18, %v604_v21  ;;  %v308_v18 = vld [vmem:[%s3545_s16 + $0x3c] sm:$0xff]   ;;  %v310_v21 = vld [vmem:[%s3545_s16 + $0x44] sm:$0x1] }
  0x39   : > { %4955 = vst [vmem:[#allocation18_spill] sm:$0xff] %v3798_v25  ;;  %v3808_v45 = vpack.i.bf16 %v3798_v25, %v3795_v42  ;;  %v3834_v4 = vunpack.c.l.bf16 %v308_v18  ;;  %v3836_v22 = vunpack.c.h.bf16 %v308_v18  ;;  %v364_v32 = vunpack.c.l.bf16 %v310_v21 }
  0x3b   : > { %4956 = vst [vmem:[#allocation19_spill] sm:$0xff] %v3808_v45  ;;  %4960 = vst [vmem:[#allocation23_spill] sm:$0xff] %v3834_v4  ;;  %v475_v50 = vrot.slane %v3834_v4, 1  ;;  %v476_v51 = vrot.slane %v3836_v22, 1  ;;  %v478_v52 = vrot.slane %v364_v32, 1  ;;  %v556_v6 = vrot.slane %v3834_v4, 2 }
  0x3c   : > { %3025 = vrot.lane.b32.xlu0 %v3780_v7, %s3474_s21  ;;  %3040 = vrot.lane.b32.xlu1 %v3784_v34, %s3473_s20  ;;  %4961 = vst [vmem:[#allocation24_spill] sm:$0xff] %v3836_v22  ;;  %v557_v12 = vrot.slane %v3836_v22, 2  ;;  %v559_v41 = vrot.slane %v364_v32, 2 }
  0x3d   : > { %v3861_v18 = vsel %vm449_vm1, %v475_v50, %v476_v51  ;;  %v3864_v21 = vsel %vm449_vm1, %v476_v51, %v478_v52  ;;  %v3885_v51 = vunpack.c.l.bf16 %v344_v46  ;;  %v3887_v52 = vunpack.c.h.bf16 %v344_v46 }
  0x3e   : > { %4964 = vst [vmem:[#allocation27_spill] sm:$0xff] %v3861_v18  ;;  %4965 = vst [vmem:[#allocation28_spill] sm:$0xff] %v3864_v21  ;;  %v3921_v32 = vsel %vm530_vm0, %v557_v12, %v559_v41  ;;  %v314_v41 = vld [vmem:[%s3545_s16 + $0x54] sm:$0xff]  }
  0x3f   : > { %4968 = vst [vmem:[#allocation31_spill] sm:$0xff] %v3885_v51  ;;  %4969 = vst [vmem:[#allocation32_spill] sm:$0xff] %v3887_v52  ;;  %v660_v15 = vrot.slane %v3887_v52, 1  ;;  %v3104_v20 = vpack.i.bf16 %v3887_v52, %v3885_v51  ;;  %v3948_v39 = vunpack.c.l.bf16 %v314_v41  ;;  %v3950_v25 = vunpack.c.h.bf16 %v314_v41 }
  0x40   : > { %3035 = vrot.lane.b32.xlu0 %v3034_v43, %s3473_s20  ;;  %3050 = vrot.lane.b32.xlu1 %v3808_v45, %s3472_s19  ;;  %4971 = vst [vmem:[#allocation34_spill] sm:$0xff] %v3921_v32 }
  0x41   : > { %4976 = vst [vmem:[#allocation39_spill] sm:$0xff] %v3948_v39  ;;  %4977 = vst [vmem:[#allocation40_spill] sm:$0xff] %v3950_v25  ;;  %v485_v41 = vrot.slane %v3948_v39, 1  ;;  %v486_v42 = vrot.slane %v3950_v25, 1 }
  0x44   : > { %3045 = vrot.lane.b32.xlu0 %v3044_v55, %s3472_s19  ;;  %3060 = vrot.lane.b32.xlu1 %v3815_v56, %s3474_s21 }
  0x48   : > { %3055 = vrot.lane.b32.xlu0 %v3054_v3, %s3474_s21  ;;  %3070 = vrot.lane.b32.xlu1 %v3709_v36, %s3473_s20  ;;  %v3074_v36 = vpack.i.bf16 %v3836_v22, %v3834_v4  ;;  %v3867_v3 = vsel %vm449_vm1, %v525_v62, %v526_v5  ;;  %v4881_v62 = vunpack.c.l.bf16 %v3874_v35  ;;  %v659_v5 = vrot.slane %v3885_v51, 1  ;;  %v313_v35 = vld [vmem:[%s3545_s16 + $0x50] sm:$0x1]  ;;  %v316_v51 = vld [vmem:[%s3545_s16 + $0x5c] sm:$0x1] }
  0x49   : > { %v3883_v50 = vpack.i.bf16 %v3870_v40, %v3867_v3  ;;  %v367_v52 = vunpack.c.l.bf16 %v313_v35 }
  0x4a   : > { %v662_v46 = vrot.slane %v4881_v62, 1  ;;  %v3910_v62 = vld [vmem:[%s4869_s1 + $0x80] sm:$0xff]  }
  0x4b   : > { %4967 = vst [vmem:[#allocation30_spill] sm:$0xff] %v3883_v50  ;;  %2831 = vmatprep.subr.bf16.mxu1 %v3910_v62 }
  0x4c   : > { %3065 = vrot.lane.b32.xlu0 %v3064_v29, %s3473_s20  ;;  %3080 = vrot.lane.b32.xlu1 %v3736_v47, %s3472_s19  ;;  %v3084_v47 = vpack.i.bf16 %v3864_v21, %v3861_v18  ;;  %v2656_v21 = vld [vmem:[%s3545_s16 + $0x90] sm:$0xff]  }
  0x50   : > { %3075 = vrot.lane.b32.xlu0 %v3074_v36, %s3472_s19  ;;  %3090 = vrot.lane.b32.xlu1 %v3744_v58, %s3474_s21  ;;  %v3094_v58 = vpack.i.bf16 %v3772_v33, %v3769_v30  ;;  %v661_v30 = vsel %vm449_vm1, %v659_v5, %v660_v15  ;;  %v663_v33 = vsel %vm449_vm1, %v660_v15, %v662_v46 }
  0x51   : > { %v3918_v5 = vsel %vm530_vm0, %v556_v6, %v557_v12  ;;  %v483_v12 = vrot.slane %v367_v52, 1 }
  0x52   : > { %4970 = vst [vmem:[#allocation33_spill] sm:$0xff] %v3918_v5 }
  0x54   : > { %3085 = vrot.lane.b32.xlu0 %v3084_v47, %s3474_s21  ;;  %3100 = vrot.lane.b32.xlu1 %v3883_v50, %s3473_s20 }
  0x58   : > { %3095 = vrot.lane.b32.xlu0 %v3094_v58, %s3473_s20  ;;  %3110 = vrot.lane.b32.xlu1 %v3034_v43, %s3472_s19  ;;  %v2653_v58 = vld [vmem:[%s3545_s16 + $0x48] sm:$0xff]   ;;  %v3114_v43 = vpack.i.bf16 %v663_v33, %v661_v30 }
  0x59   : > { %v3923_v15 = vunpack.c.l.bf16 %v2653_v58  ;;  %v3925_v46 = vunpack.c.h.bf16 %v2653_v58 }
  0x5b   : > { %4972 = vst [vmem:[#allocation35_spill] sm:$0xff] %v3923_v15  ;;  %4973 = vst [vmem:[#allocation36_spill] sm:$0xff] %v3925_v46  ;;  %v480_v6 = vrot.slane %v3923_v15, 1  ;;  %v481_v30 = vrot.slane %v3925_v46, 1  ;;  %v3134_v33 = vpack.i.bf16 %v3925_v46, %v3923_v15  ;;  %v561_v35 = vrot.slane %v3923_v15, 2  ;;  %v2654_v15 = vld [vmem:[%s3545_s16 + $0x60] sm:$0xff]  }
  0x5c   : > { %3105 = vrot.lane.b32.xlu0 %v3104_v20, %s3472_s19  ;;  %3120 = vrot.lane.b32.xlu1 %v3044_v55, %s3474_s21  ;;  %v3124_v20 = vpack.i.bf16 %v3921_v32, %v3918_v5  ;;  %v562_v58 = vrot.slane %v3925_v46, 2  ;;  %v319_v46 = vld [vmem:[%s3545_s16 + $0x68] sm:$0x1]  ;;  %v3995_v32 = vunpack.c.l.bf16 %v2654_v15 }
  0x5d   : > { %v3944_v55 = vsel %vm449_vm1, %v481_v30, %v483_v12  ;;  %v370_v12 = vunpack.c.l.bf16 %v316_v51  ;;  %v373_v4 = vunpack.c.l.bf16 %v319_v46 }
  0x5e   : > { %4975 = vst [vmem:[#allocation38_spill] sm:$0xff] %v3944_v55  ;;  %4983 = vst [vmem:[#allocation46_spill] sm:$0xff] %v3995_v32  ;;  %v571_v22 = vrot.slane %v3995_v32, 2 }
  0x5f   : > { %v569_v51 = vrot.slane %v370_v12, 2 }
  0x60   : > { %3115 = vrot.lane.b32.xlu0 %v3114_v43, %s3474_s21  ;;  %3130 = vrot.lane.b32.xlu1 %v3780_v7, %s3473_s20  ;;  %v3941_v7 = vsel %vm449_vm1, %v480_v6, %v481_v30  ;;  %v564_v43 = vrot.slane %v367_v52, 2  ;;  %v3959_v30 = vsel %vm530_vm0, %v561_v35, %v562_v58  ;;  %v488_v6 = vrot.slane %v370_v12, 1 }
  0x61   : > { %4974 = vst [vmem:[#allocation37_spill] sm:$0xff] %v3941_v7  ;;  %4978 = vst [vmem:[#allocation41_spill] sm:$0xff] %v3959_v30 }
  0x62   : > { %v3962_v52 = vsel %vm530_vm0, %v562_v58, %v564_v43  ;;  %v566_v58 = vrot.slane %v3948_v39, 2  ;;  %v567_v43 = vrot.slane %v3950_v25, 2 }
  0x63   : > { %4979 = vst [vmem:[#allocation42_spill] sm:$0xff] %v3962_v52  ;;  %v3154_v35 = vpack.i.bf16 %v3962_v52, %v3959_v30  ;;  %v2655_v30 = vld [vmem:[%s3545_s16 + $0x78] sm:$0xff]   ;;  %v4025_v52 = vld [vmem:[%s3545_s16 + $0x80] sm:$0x1] }
  0x64   : > { %3125 = vrot.lane.b32.xlu0 %v3124_v20, %s3473_s20  ;;  %3140 = vrot.lane.b32.xlu1 %v3064_v29, %s3472_s19  ;;  %v3144_v29 = vpack.i.bf16 %v3944_v55, %v3941_v7  ;;  %v3981_v7 = vsel %vm449_vm1, %v485_v41, %v486_v42  ;;  %v320_v55 = vld [vmem:[%s3545_s16 + $0x6c] sm:$0xff]   ;;  %v3990_v5 = vsel %vm530_vm0, %v566_v58, %v567_v43 }
  0x65   : > { %4980 = vst [vmem:[#allocation43_spill] sm:$0xff] %v3981_v7  ;;  %4981 = vst [vmem:[#allocation44_spill] sm:$0xff] %v3990_v5  ;;  %v3993_v12 = vsel %vm530_vm0, %v567_v43, %v569_v51  ;;  %v4000_v41 = vsel %vm449_vm1, %v486_v42, %v488_v6  ;;  %v4006_v58 = vunpack.c.l.bf16 %v320_v55  ;;  %v4008_v43 = vunpack.c.h.bf16 %v320_v55 }
  0x66   : > { %4982 = vst [vmem:[#allocation45_spill] sm:$0xff] %v3993_v12  ;;  %4984 = vst [vmem:[#allocation47_spill] sm:$0xff] %v4000_v41  ;;  %v3174_v46 = vpack.i.bf16 %v4000_v41, %v3981_v7  ;;  %v4029_v24 = vpack.i.bf16 %v3993_v12, %v3990_v5  ;;  %v4052_v12 = vunpack.c.l.bf16 %v2655_v30 }
  0x67   : > { %4986 = vst [vmem:[#allocation49_spill] sm:$0xff] %v4006_v58  ;;  %4987 = vst [vmem:[#allocation50_spill] sm:$0xff] %v4008_v43  ;;  %v576_v55 = vrot.slane %v4006_v58, 2  ;;  %v577_v6 = vrot.slane %v4008_v43, 2  ;;  %v495_v56 = vrot.slane %v4006_v58, 1  ;;  %v496_v63 = vrot.slane %v4008_v43, 1 }
  0x68   : > { %3135 = vrot.lane.b32.xlu0 %v3134_v33, %s3472_s19  ;;  %3150 = vrot.lane.b32.xlu1 %v3074_v36, %s3474_s21  ;;  %v3978_v36 = vpack.i.bf16 %v3950_v25, %v3948_v39  ;;  %v4002_v25 = vunpack.c.h.bf16 %v2654_v15  ;;  %v574_v15 = vrot.slane %v373_v4, 2  ;;  %v490_v39 = vrot.slane %v3995_v32, 1  ;;  %4992 = vst [vmem:[#allocation55_spill] sm:$0xff] %v4052_v12 }
  0x69   : > { %v4045_v14 = vsel %vm530_vm0, %v576_v55, %v577_v6  ;;  %v4061_v55 = vunpack.c.l.bf16 %v326_v23 }
  0x6a   : > { %4985 = vst [vmem:[#allocation48_spill] sm:$0xff] %v4002_v25  ;;  %v572_v42 = vrot.slane %v4002_v25, 2  ;;  %4990 = vst [vmem:[#allocation53_spill] sm:$0xff] %v4045_v14 }
  0x6c   : > { %3145 = vrot.lane.b32.xlu0 %v3144_v29, %s3474_s21  ;;  %3160 = vrot.lane.b32.xlu1 %v3084_v47, %s3473_s20  ;;  %v3985_v47 = vld [vmem:[%s3545_s16 + $0x74] sm:$0x1]  ;;  %v4033_v7 = vsel %vm530_vm0, %v571_v22, %v572_v42  ;;  %v4036_v41 = vsel %vm530_vm0, %v572_v42, %v574_v15  ;;  %v4054_v42 = vunpack.c.h.bf16 %v2655_v30  ;;  %v581_v22 = vrot.slane %v4052_v12, 2 }
  0x6d   : > { %v4905_v51 = vunpack.c.l.bf16 %v3985_v47  ;;  %4988 = vst [vmem:[#allocation51_spill] sm:$0xff] %v4033_v7  ;;  %4989 = vst [vmem:[#allocation52_spill] sm:$0xff] %v4036_v41 }
  0x6e   : > { %4993 = vst [vmem:[#allocation56_spill] sm:$0xff] %v4054_v42  ;;  %v582_v15 = vrot.slane %v4054_v42, 2 }
  0x70   : > { %3155 = vrot.lane.b32.xlu0 %v3154_v35, %s3473_s20  ;;  %3170 = vrot.lane.b32.xlu1 %v3124_v20, %s3472_s19  ;;  %v579_v20 = vrot.slane %v4905_v51, 2  ;;  %v493_v51 = vrot.slane %v373_v4, 1  ;;  %v3194_v4 = vpack.i.bf16 %v4002_v25, %v3995_v32  ;;  %v4997_v32 = vunpack.c.l.bf16 %v4040_v13 }
  0x71   : > { %v4090_v31 = vsel %vm530_vm0, %v581_v22, %v582_v15 }
  0x72   : > { %v4048_v5 = vsel %vm530_vm0, %v577_v6, %v579_v20  ;;  %v4063_v20 = vunpack.c.h.bf16 %v326_v23  ;;  %v586_v6 = vrot.slane %v4061_v55, 2 }
  0x73   : > { %4991 = vst [vmem:[#allocation54_spill] sm:$0xff] %v4048_v5 }
  0x74   : > { %3165 = vrot.lane.b32.xlu0 %v3978_v36, %s3472_s19  ;;  %3180 = vrot.lane.b32.xlu1 %v3134_v33, %s3474_s21  ;;  %v491_v33 = vrot.slane %v4002_v25, 1  ;;  %v589_v25 = vrot.slane %v4997_v32, 2 }
  0x76   : > { %v4067_v30 = vsel %vm449_vm1, %v490_v39, %v491_v33  ;;  %v4077_v23 = vsel %vm449_vm1, %v491_v33, %v493_v51  ;;  %v587_v39 = vrot.slane %v4063_v20, 2  ;;  %v332_v51 = vld [vmem:[%s3545_s16 + $0x9c] sm:$0xff]   ;;  %v4097_v33 = vld [vmem:[%s3545_s16 + $0xa4] sm:$0x1] }
  0x77   : > { %4994 = vst [vmem:[#allocation57_spill] sm:$0xff] %v4067_v30  ;;  %4996 = vst [vmem:[#allocation58_spill] sm:$0xff] %v4077_v23  ;;  %v4117_v1 = vunpack.c.l.bf16 %v332_v51 }
  0x78   : > { %3175 = vrot.lane.b32.xlu0 %v3174_v46, %s3474_s21  ;;  %3190 = vrot.lane.b32.xlu1 %v3144_v29, %s3473_s20  ;;  %v4995_v29 = vunpack.c.l.bf16 %v4025_v52  ;;  %v4103_v32 = vsel %vm530_vm0, %v586_v6, %v587_v39  ;;  %v4106_v50 = vsel %vm530_vm0, %v587_v39, %v589_v25  ;;  %v4926_v6 = vunpack.c.l.bf16 %v4097_v33 }
  0x7a   : > { %v584_v18 = vrot.slane %v4995_v29, 2  ;;  %v3204_v29 = vpack.i.bf16 %v4077_v23, %v4067_v30  ;;  %v4110_v30 = vunpack.c.l.bf16 %v2656_v21  ;;  %v596_v23 = vrot.slane %v4117_v1, 2 }
  0x7b   : > { %v599_v0 = vrot.slane %v4926_v6, 2 }
  0x7c   : > { %3185 = vrot.lane.b32.xlu0 %v4029_v24, %s3473_s20  ;;  %3200 = vrot.lane.b32.xlu1 %v3154_v35, %s3472_s19  ;;  %v4093_v35 = vsel %vm530_vm0, %v582_v15, %v584_v18  ;;  %v4112_v18 = vunpack.c.h.bf16 %v2656_v21  ;;  %v4922_v15 = vunpack.c.l.bf16 %v4085_v28  ;;  %v591_v25 = vrot.slane %v4110_v30, 2 }
  0x7d   : > { %v3214_v21 = vpack.i.bf16 %v4036_v41, %v4033_v7 }
  0x7e   : > { %v592_v39 = vrot.slane %v4112_v18, 2  ;;  %v594_v22 = vrot.slane %v4922_v15, 2  ;;  %v4998_v15 = vunpack.c.l.bf16 %v3985_v47 }
  0x80   : > { %3195 = vrot.lane.b32.xlu0 %v3194_v4, %s3472_s19  ;;  %3210 = vrot.lane.b32.xlu1 %v3978_v36, %s3474_s21  ;;  %v4119_v36 = vunpack.c.h.bf16 %v332_v51  ;;  %v498_v2 = vrot.slane %v4998_v15, 1  ;;  %v4141_v45 = vsel %vm530_vm0, %v591_v25, %v592_v39  ;;  %v4144_v7 = vsel %vm530_vm0, %v592_v39, %v594_v22 }
  0x81   : > { %v4158_v25 = vsel %vm449_vm1, %v495_v56, %v496_v63  ;;  %v501_v56 = vrot.slane %v4054_v42, 1  ;;  %v4177_v39 = vpack.i.bf16 %v4048_v5, %v4045_v14 }
  0x82   : > { %v597_v51 = vrot.slane %v4119_v36, 2  ;;  %4999 = vst [vmem:[#allocation59_spill] sm:$0xff] %v4158_v25  ;;  %v4161_v22 = vsel %vm449_vm1, %v496_v63, %v498_v2  ;;  %v5001_v63 = vunpack.c.l.bf16 %v4025_v52 }
  0x83   : > { %5000 = vst [vmem:[#allocation60_spill] sm:$0xff] %v4161_v22 }
  0x84   : > { %3205 = vrot.lane.b32.xlu0 %v3204_v29, %s3474_s21  ;;  %3220 = vrot.lane.b32.xlu1 %v3174_v46, %s3473_s20  ;;  %v3224_v46 = vpack.i.bf16 %v4008_v43, %v4006_v58  ;;  %v4150_v6 = vsel %vm530_vm0, %v596_v23, %v597_v51  ;;  %v4153_v47 = vsel %vm530_vm0, %v597_v51, %v599_v0  ;;  %v500_v51 = vrot.slane %v4052_v12, 1 }
  0x85   : > { %v3234_v0 = vpack.i.bf16 %v4161_v22, %v4158_v25  ;;  %v503_v2 = vrot.slane %v5001_v63, 1  ;;  %v4181_v22 = vpack.i.bf16 %v4054_v42, %v4052_v12 }
  0x86   : > { %v4184_v52 = vsel %vm449_vm1, %v500_v51, %v501_v56 }
  0x87   : > { %v4187_v63 = vsel %vm449_vm1, %v501_v56, %v503_v2 }
  0x88   : > { %3215 = vrot.lane.b32.xlu0 %v3214_v21, %s3473_s20  ;;  %3230 = vrot.lane.b32.xlu1 %v4029_v24, %s3472_s19 }
  0x8a   : > { %v2946_v58 = vpop.permute.xlu1 %2945 }
  0x8b   : > { %v2948_v19 = vunpack.i.h.bf16 %v2946_v58 }
  0x8c   : > { %3225 = vrot.lane.b32.xlu0 %v3224_v46, %s3472_s19  ;;  %3240 = vrot.lane.b32.xlu1 %v3194_v4, %s3474_s21 }
  0x8e   : > { %v2956_v24 = vpop.permute.xlu0 %2955  ;;  %v2951_v23 = vpop.permute.xlu1 %2950 }
  0x8f   : > { %v2958_v4 = vunpack.i.h.bf16 %v2956_v24  ;;  %v2957_v15 = vunpack.i.l.bf16 %v2956_v24  ;;  %v2947_v24 = vunpack.i.l.bf16 %v2946_v58  ;;  %v2953_v44 = vunpack.i.h.bf16 %v2951_v23 }
  0x90   : > { %3235 = vrot.lane.b32.xlu0 %v3234_v0, %s3474_s21  ;;  %3250 = vrot.lane.b32.xlu1 %v3204_v29, %s3473_s20  ;;  %v2952_v34 = vunpack.i.l.bf16 %v2951_v23 }
  0x92   : > { %v2961_v43 = vpop.permute.xlu0 %2960  ;;  %v2966_v25 = vpop.permute.xlu1 %2965 }
  0x93   : > { %v2963_v29 = vunpack.i.h.bf16 %v2961_v43  ;;  %v2962_v41 = vunpack.i.l.bf16 %v2961_v43  ;;  %v2968_v14 = vunpack.i.h.bf16 %v2966_v25  ;;  %v2967_v5 = vunpack.i.l.bf16 %v2966_v25 }
  0x94   : > { %3245 = vrot.lane.b32.xlu0 %v4177_v39, %s3473_s20  ;;  %3260 = vrot.lane.b32.xlu1 %v3214_v21, %s3472_s19  ;;  %v1376_v43 = vsel %vm1277_vm2, %v3608_v53, %v2957_v15  ;;  %v1377_v25 = vsel %vm1277_vm2, %v3611_v54, %v2958_v4 }
  0x95   : > { %v1279_v51 = vsel %vm1277_vm2, %v3565_v17, %v2963_v29  ;;  %v1278_v56 = vsel %vm1277_vm2, %v3563_v16, %v2962_v41  ;;  %v4207_v16 = vpack.i.bf16 %v4187_v63, %v4184_v52  ;;  %v1408_v17 = vsel %vm1310_vm3, %v1376_v43, %v2947_v24 }
  0x96   : > { %v1311_v58 = vsel %vm1310_vm3, %v1278_v56, %v2967_v5  ;;  %v1312_v23 = vsel %vm1310_vm3, %v1279_v51, %v2968_v14  ;;  %v2971_v2 = vpop.permute.xlu0 %2970  ;;  %v2986_v12 = vpop.permute.xlu1 %2985  ;;  %v1409_v53 = vsel %vm1310_vm3, %v1377_v25, %v2948_v19  ;;  %v506_v51 = vrot.slane %v4063_v20, 1 }
  0x97   : > { %v2973_v21 = vunpack.i.h.bf16 %v2971_v2  ;;  %v2972_v42 = vunpack.i.l.bf16 %v2971_v2  ;;  %v1344_v5 = vsel %vm1343_vm4, %v1311_v58, %v2952_v34  ;;  %v1345_v41 = vsel %vm1343_vm4, %v1312_v23, %v2953_v44 }
  0x98   : > { %3255 = vrot.lane.b32.xlu0 %v4181_v22, %s3472_s19  ;;  %3270 = vrot.lane.b32.xlu1 %v3224_v46, %s3474_s21  ;;  %v505_v46 = vrot.slane %v4061_v55, 1  ;;  %v5002_v56 = vunpack.c.l.bf16 %v4040_v13  ;;  %v1472_v19 = vpack.c.bf16 %v1345_v41, %v1344_v5  ;;  %v4223_v34 = vpack.i.bf16 %v4093_v35, %v4090_v31 }
  0x99   : > { %v1440_v54 = vsel %vm1343_vm4, %v1408_v17, %v2972_v42  ;;  %v1441_v14 = vsel %vm1343_vm4, %v1409_v53, %v2973_v21  ;;  %v2988_v44 = vunpack.i.h.bf16 %v2986_v12  ;;  %v2987_v42 = vunpack.i.l.bf16 %v2986_v12 }
  0x9a   : > { %v2976_v15 = vpop.permute.xlu0 %2975  ;;  %v2991_v4 = vpop.permute.xlu1 %2990  ;;  %v1473_v29 = vpack.c.bf16 %v1441_v14, %v1440_v54  ;;  %v508_v24 = vrot.slane %v5002_v56, 1  ;;  %v4228_v13 = vpack.i.bf16 %v4063_v20, %v4061_v55  ;;  %v4231_v2 = vsel %vm449_vm1, %v505_v46, %v506_v51 }
  0x9b   : > { %v2978_v58 = vunpack.i.h.bf16 %v2976_v15  ;;  %v2977_v23 = vunpack.i.l.bf16 %v2976_v15  ;;  %v2993_v17 = vunpack.i.h.bf16 %v2991_v4  ;;  %v2992_v53 = vunpack.i.l.bf16 %v2991_v4 }
  0x9c   : > { %3265 = vrot.lane.b32.xlu0 %v4207_v16, %s3474_s21  ;;  %1751 = vmatprep.mubr.bf16.mxu0 %v1473_v29  ;;  %v4234_v21 = vsel %vm449_vm1, %v506_v51, %v508_v24  ;;  %v1280_v14 = vsel %vm1277_vm2, %v3554_v10, %v2987_v42 }
  0x9d   : > { %3280 = vrot.lane.b32.xlu1 %v3234_v0, %s3473_s20  ;;  %1752 = vmatmul.mubr.bf16.vlgmr.msra.gmra.mrb[0].mxu0 %v1472_v19  ;;  %v1281_v0 = vsel %vm1277_vm2, %v3556_v11, %v2988_v44  ;;  %v4246_v4 = vpack.i.bf16 %v4234_v21, %v4231_v2  ;;  %v1379_v46 = vsel %vm1277_vm2, %v3602_v49, %v2978_v58 }
  0x9e   : > { %v2981_v43 = vpop.permute.xlu0 %2980  ;;  %v3001_v25 = vpop.permute.xlu1 %3000  ;;  %v1378_v11 = vsel %vm1277_vm2, %v3599_v48, %v2977_v23  ;;  %v1313_v10 = vsel %vm1310_vm3, %v1280_v14, %v2992_v53  ;;  %v1314_v24 = vsel %vm1310_vm3, %v1281_v0, %v2993_v17  ;;  %v510_v23 = vrot.slane %v4110_v30, 1 }
  0x9f   : > { %v2983_v12 = vunpack.i.h.bf16 %v2981_v43  ;;  %v2982_v54 = vunpack.i.l.bf16 %v2981_v43  ;;  %v3003_v5 = vunpack.i.h.bf16 %v3001_v25  ;;  %v3002_v41 = vunpack.i.l.bf16 %v3001_v25 }
  0xa0   : > { %3275 = vrot.lane.b32.xlu0 %v4223_v34, %s3473_s20  ;;  %v511_v17 = vrot.slane %v4112_v18, 1  ;;  %v5003_v53 = vunpack.c.l.bf16 %v4085_v28  ;;  %v4272_v14 = vpack.i.bf16 %v4106_v50, %v4103_v32 }
  0xa1   : > { %3290 = vrot.lane.b32.xlu1 %v4177_v39, %s3472_s19  ;;  %v1410_v39 = vsel %vm1310_vm3, %v1378_v11, %v2982_v54  ;;  %v1411_v19 = vsel %vm1310_vm3, %v1379_v46, %v2983_v12  ;;  %v1346_v44 = vsel %vm1343_vm4, %v1313_v10, %v3002_v41  ;;  %v1347_v42 = vsel %vm1343_vm4, %v1314_v24, %v3003_v5 }
  0xa2   : > { %v2996_v15 = vpop.permute.xlu0 %2995  ;;  %v3011_v29 = vpop.permute.xlu1 %3010  ;;  %v513_v12 = vrot.slane %v5003_v53, 1  ;;  %v1475_v0 = vpack.c.bf16 %v1347_v42, %v1346_v44  ;;  %v4278_v5 = vpack.i.bf16 %v4112_v18, %v4110_v30  ;;  %v4281_v46 = vsel %vm449_vm1, %v510_v23, %v511_v17 }
  0xa3   : > { %v2998_v51 = vunpack.i.h.bf16 %v2996_v15  ;;  %v2997_v56 = vunpack.i.l.bf16 %v2996_v15  ;;  %v3013_v54 = vunpack.i.h.bf16 %v3011_v29 }
  0xa4   : > { %3285 = vrot.lane.b32.xlu0 %v4228_v13, %s3472_s19  ;;  %v4284_v11 = vsel %vm449_vm1, %v511_v17, %v513_v12 }
  0xa5   : > { %3300 = vrot.lane.b32.xlu1 %v4181_v22, %s3474_s21  ;;  %v1442_v49 = vsel %vm1343_vm4, %v1410_v39, %v2997_v56  ;;  %v1443_v48 = vsel %vm1343_vm4, %v1411_v19, %v2998_v51  ;;  %v3012_v22 = vunpack.i.l.bf16 %v3011_v29  ;;  %v1283_v51 = vsel %vm1277_vm2, %v3552_v9, %v3013_v54 }
  0xa6   : > { %v3006_v43 = vpop.permute.xlu0 %3005  ;;  %v3021_v25 = vpop.permute.xlu1 %3020  ;;  %v1476_v58 = vpack.c.bf16 %v1443_v48, %v1442_v49  ;;  %v4300_v42 = vpack.i.bf16 %v4284_v11, %v4281_v46 }
  0xa7   : > { %v3008_v28 = vunpack.i.h.bf16 %v3006_v43  ;;  %v3007_v41 = vunpack.i.l.bf16 %v3006_v43  ;;  %v3023_v56 = vunpack.i.h.bf16 %v3021_v25  ;;  %v3022_v10 = vunpack.i.l.bf16 %v3021_v25 }
  0xa8   : > { %3295 = vrot.lane.b32.xlu0 %v4246_v4, %s3474_s21  ;;  %1759 = vmatprep.mubr.bf16.mxu0 %v1476_v58 }
  0xa9   : > { %3310 = vrot.lane.b32.xlu1 %v4207_v16, %s3473_s20  ;;  %1760 = vmatmul.mubr.bf16.gmra.mrb[4].mxu0 %v1475_v0  ;;  %v1282_v16 = vsel %vm1277_vm2, %v3550_v8, %v3012_v22  ;;  %v1381_v48 = vsel %vm1277_vm2, %v3687_v27, %v3008_v28  ;;  %v1380_v9 = vsel %vm1277_vm2, %v3684_v26, %v3007_v41  ;;  %v515_v41 = vrot.slane %v4117_v1, 1 }
  0xaa   : > { %v3016_v15 = vpop.permute.xlu0 %3015  ;;  %v3031_v29 = vpop.permute.xlu1 %3030  ;;  %v1315_v43 = vsel %vm1310_vm3, %v1282_v16, %v3022_v10  ;;  %v1316_v25 = vsel %vm1310_vm3, %v1283_v51, %v3023_v56 }
  0xab   : > { %v3018_v24 = vunpack.i.h.bf16 %v3016_v15  ;;  %v3017_v39 = vunpack.i.l.bf16 %v3016_v15  ;;  %v3033_v19 = vunpack.i.h.bf16 %v3031_v29  ;;  %v3032_v49 = vunpack.i.l.bf16 %v3031_v29 }
  0xac   : > { %3305 = vrot.lane.b32.xlu0 %v4272_v14, %s3473_s20  ;;  %v516_v15 = vrot.slane %v4119_v36, 1  ;;  %v5004_v29 = vunpack.c.l.bf16 %v4097_v33  ;;  %v4328_v33 = vpack.i.bf16 %v4119_v36, %v4117_v1 }
  0xad   : > { %3320 = vrot.lane.b32.xlu1 %v4223_v34, %s3472_s19  ;;  %v1412_v34 = vsel %vm1310_vm3, %v1380_v9, %v3017_v39  ;;  %v1413_v17 = vsel %vm1310_vm3, %v1381_v48, %v3018_v24  ;;  %v1348_v26 = vsel %vm1343_vm4, %v1315_v43, %v3032_v49  ;;  %v1349_v27 = vsel %vm1343_vm4, %v1316_v25, %v3033_v19 }
  0xae   : > { %v3026_v44 = vpop.permute.xlu0 %3025  ;;  %v3041_v8 = vpop.permute.xlu1 %3040  ;;  %v1478_v28 = vpack.c.bf16 %v1349_v27, %v1348_v26  ;;  %v518_v51 = vrot.slane %v5004_v29, 1  ;;  %v4331_v49 = vsel %vm449_vm1, %v515_v41, %v516_v15 }
  0xaf   : > { %v3028_v58 = vunpack.i.h.bf16 %v3026_v44  ;;  %v3027_v23 = vunpack.i.l.bf16 %v3026_v44  ;;  %v3043_v16 = vunpack.i.h.bf16 %v3041_v8  ;;  %v3042_v56 = vunpack.i.l.bf16 %v3041_v8 }
  0xb0   : > { %3315 = vrot.lane.b32.xlu0 %v4278_v5, %s3472_s19  ;;  %v4334_v48 = vsel %vm449_vm1, %v516_v15, %v518_v51 }
  0xb1   : > { %3330 = vrot.lane.b32.xlu1 %v4228_v13, %s3474_s21  ;;  %v1444_v53 = vsel %vm1343_vm4, %v1412_v34, %v3027_v23  ;;  %v1445_v12 = vsel %vm1343_vm4, %v1413_v17, %v3028_v58  ;;  %v4322_v13 = vpack.i.bf16 %v4144_v7, %v4141_v45  ;;  %v1306_v25 = vsel %vm1277_vm2, %v3711_v37, %v3042_v56 }
  0xb2   : > { %v3036_v54 = vpop.permute.xlu0 %3035  ;;  %v3051_v22 = vpop.permute.xlu1 %3050  ;;  %v1479_v0 = vpack.c.bf16 %v1445_v12, %v1444_v53  ;;  %v4346_v26 = vpack.i.bf16 %v4334_v48, %v4331_v49 }
  0xb3   : > { %v3038_v39 = vunpack.i.h.bf16 %v3036_v54  ;;  %v3037_v19 = vunpack.i.l.bf16 %v3036_v54  ;;  %v3053_v9 = vunpack.i.h.bf16 %v3051_v22  ;;  %v3052_v44 = vunpack.i.l.bf16 %v3051_v22 }
  0xb4   : > { %3325 = vrot.lane.b32.xlu0 %v4300_v42, %s3474_s21  ;;  %1767 = vmatprep.mubr.bf16.mxu0 %v1479_v0 }
  0xb5   : > { %3340 = vrot.lane.b32.xlu1 %v4246_v4, %s3473_s20  ;;  %1768 = vmatmul.mubr.bf16.gmra.mrb[8].mxu0 %v1478_v28  ;;  %v1307_v4 = vsel %vm1277_vm2, %v3713_v38, %v3043_v16  ;;  %v1404_v12 = vsel %vm1277_vm2, %v3867_v3, %v3037_v19  ;;  %v1405_v54 = vsel %vm1277_vm2, %v3870_v40, %v3038_v39 }
  0xb6   : > { %v3046_v10 = vpop.permute.xlu0 %3045  ;;  %v3061_v24 = vpop.permute.xlu1 %3060  ;;  %v1339_v22 = vsel %vm1310_vm3, %v1306_v25, %v3052_v44  ;;  %v1340_v0 = vsel %vm1310_vm3, %v1307_v4, %v3053_v9 }
  0xb7   : > { %v3048_v8 = vunpack.i.h.bf16 %v3046_v10  ;;  %v3047_v43 = vunpack.i.l.bf16 %v3046_v10  ;;  %v3063_v58 = vunpack.i.h.bf16 %v3061_v24  ;;  %v3062_v23 = vunpack.i.l.bf16 %v3061_v24 }
  0xb8   : > { %3335 = vrot.lane.b32.xlu0 %v4322_v13, %s3473_s20  ;;  %v3364_v10 = vpack.i.bf16 %v4153_v47, %v4150_v6 }
  0xb9   : > { %3350 = vrot.lane.b32.xlu1 %v4272_v14, %s3472_s19  ;;  %v1436_v14 = vsel %vm1310_vm3, %v1404_v12, %v3047_v43  ;;  %v1437_v28 = vsel %vm1310_vm3, %v1405_v54, %v3048_v8  ;;  %v1372_v40 = vsel %vm1343_vm4, %v1339_v22, %v3062_v23  ;;  %v1373_v15 = vsel %vm1343_vm4, %v1340_v0, %v3063_v58 }
  0xba   : > { %v3056_v34 = vpop.permute.xlu0 %3055  ;;  %v3071_v17 = vpop.permute.xlu1 %3070  ;;  %v1514_v56 = vpack.c.bf16 %v1373_v15, %v1372_v40  ;;  %v4375_v43 = vpack.i.bf16 %v3713_v38, %v3711_v37 }
  0xbb   : > { %v3058_v27 = vunpack.i.h.bf16 %v3056_v34  ;;  %v3057_v53 = vunpack.i.l.bf16 %v3056_v34  ;;  %v3073_v24 = vunpack.i.h.bf16 %v3071_v17  ;;  %v3072_v39 = vunpack.i.l.bf16 %v3071_v17 }
  0xbc   : > { %3345 = vrot.lane.b32.xlu0 %v4328_v33, %s3472_s19 }
  0xbd   : > { %3360 = vrot.lane.b32.xlu1 %v4278_v5, %s3474_s21  ;;  %v1468_v41 = vsel %vm1343_vm4, %v1436_v14, %v3057_v53  ;;  %v1469_v3 = vsel %vm1343_vm4, %v1437_v28, %v3058_v27  ;;  %v3443_v5 = vld [vmem:[%s4869_s1 + $0x88] sm:$0xff]   ;;  %v1284_v34 = vsel %vm1277_vm2, %v3627_v60, %v3072_v39 }
  0xbe   : > { %v3066_v29 = vpop.permute.xlu0 %3065  ;;  %v3081_v51 = vpop.permute.xlu1 %3080  ;;  %v1515_v16 = vpack.c.bf16 %v1469_v3, %v1468_v41 }
  0xbf   : > { %v3068_v44 = vunpack.i.h.bf16 %v3066_v29  ;;  %v3067_v8 = vunpack.i.l.bf16 %v3066_v29  ;;  %v3083_v4 = vunpack.i.h.bf16 %v3081_v51  ;;  %v3082_v25 = vunpack.i.l.bf16 %v3081_v51  ;;  %v5005_v29 = vld [vmem:[#allocation14_spill] sm:$0xff] }
  0xc0   : > { %3355 = vrot.lane.b32.xlu0 %v4346_v26, %s3474_s21  ;;  %1863 = vmatprep.mubr.bf16.mxu1 %v1515_v16 }
  0xc1   : > { %3370 = vrot.lane.b32.xlu1 %v4300_v42, %s3473_s20  ;;  %1864 = vmatmul.mubr.bf16.vlgmr.msra.gmra.mrb[0].mxu1 %v1514_v56  ;;  %v1285_v42 = vsel %vm1277_vm2, %v3629_v61, %v3073_v24  ;;  %v1382_v53 = vsel %vm1277_vm2, %v3747_v59, %v3067_v8  ;;  %v1317_v61 = vsel %vm1310_vm3, %v1284_v34, %v3082_v25  ;;  %v5006_v24 = vld [vmem:[#allocation9_spill] sm:$0xff] }
  0xc2   : > { %v3076_v19 = vpop.permute.xlu0 %3075  ;;  %v3091_v9 = vpop.permute.xlu1 %3090  ;;  %2832 = vmatpush3.bf16.msra.mxu1 %v3910_v62  ;;  %v1383_v62 = vsel %vm1277_vm2, %v3750_v57, %v3068_v44  ;;  %v1318_v60 = vsel %vm1310_vm3, %v1285_v42, %v3083_v4  ;;  %v5008_v42 = vld [vmem:[#allocation19_spill] sm:$0xff] }
  0xc3   : > { %v3078_v58 = vunpack.i.h.bf16 %v3076_v19  ;;  %v3077_v23 = vunpack.i.l.bf16 %v3076_v19  ;;  %2833 = vmatprep.subr.bf16.mxu1 %v3443_v5  ;;  %v3093_v17 = vunpack.i.h.bf16 %v3091_v9  ;;  %v3092_v27 = vunpack.i.l.bf16 %v3091_v9  ;;  %v5007_v19 = vld [vmem:[#allocation8_spill] sm:$0xff] }
  0xc4   : > { %3365 = vrot.lane.b32.xlu0 %v3364_v10, %s3473_s20 }
  0xc5   : > { %3380 = vrot.lane.b32.xlu1 %v4322_v13, %s3472_s19  ;;  %v1414_v22 = vsel %vm1310_vm3, %v1382_v53, %v3077_v23  ;;  %v1415_v0 = vsel %vm1310_vm3, %v1383_v62, %v3078_v58  ;;  %v1350_v13 = vsel %vm1343_vm4, %v1317_v61, %v3092_v27  ;;  %v1351_v14 = vsel %vm1343_vm4, %v1318_v60, %v3093_v17  ;;  %v5010_v17 = vld [vmem:[#allocation21_spill] sm:$0xff] }
  0xc6   : > { %v3086_v37 = vpop.permute.xlu0 %3085  ;;  %v3101_v38 = vpop.permute.xlu1 %3100  ;;  %2834 = vmatpush3.bf16.msra.mxu1 %v3443_v5  ;;  %v1481_v51 = vpack.c.bf16 %v1351_v14, %v1350_v13 }
  0xc7   : > { %v3088_v12 = vunpack.i.h.bf16 %v3086_v37  ;;  %v3087_v54 = vunpack.i.l.bf16 %v3086_v37  ;;  %v3103_v40 = vunpack.i.h.bf16 %v3101_v38  ;;  %v3102_v15 = vunpack.i.l.bf16 %v3101_v38 }
  0xc8   : > { %3375 = vrot.lane.b32.xlu0 %v4375_v43, %s3472_s19 }
  0xc9   : > { %3390 = vrot.lane.b32.xlu1 %v4328_v33, %s3474_s21  ;;  %v1446_v57 = vsel %vm1343_vm4, %v1414_v22, %v3087_v54  ;;  %v1447_v59 = vsel %vm1343_vm4, %v1415_v0, %v3088_v12  ;;  %v1309_v39 = vsel %vm1277_vm2, %v5006_v24, %v3103_v40  ;;  %v1308_v9 = vsel %vm1277_vm2, %v5007_v19, %v3102_v15  ;;  %v5015_v24 = vld [vmem:[#allocation7_spill] sm:$0xff]  ;;  %v5016_v19 = vld [vmem:[#allocation6_spill] sm:$0xff] }
  0xca   : > { %v3096_v28 = vpop.permute.xlu0 %3095  ;;  %v3111_v41 = vpop.permute.xlu1 %3110  ;;  %v1482_v3 = vpack.c.bf16 %v1447_v59, %v1446_v57 }
  0xcb   : > { %v3098_v33 = vunpack.i.h.bf16 %v3096_v28  ;;  %v3097_v16 = vunpack.i.l.bf16 %v3096_v28  ;;  %v3113_v44 = vunpack.i.h.bf16 %v3111_v41  ;;  %v3112_v8 = vunpack.i.l.bf16 %v3111_v41  ;;  %v5012_v41 = vld [vmem:[#allocation2_spill] sm:$0xff] }
  0xcc   : > { %3385 = vrot.lane.b32.xlu0 %v5005_v29, %s3474_s21  ;;  %1775 = vmatprep.mubr.bf16.mxu0 %v1482_v3  ;;  %v5013_v3 = vld [vmem:[#allocation3_spill] sm:$0xff] }
  0xcd   : > { %3400 = vrot.lane.b32.xlu1 %v4346_v26, %s3473_s20  ;;  %1776 = vmatmul.mubr.bf16.gmra.mrb[12].mxu0 %v1481_v51  ;;  %v5009_v26 = vld [vmem:[#allocation22_spill] sm:$0xff]  ;;  %v1406_v27 = vsel %vm1277_vm2, %v5010_v17, %v3097_v16  ;;  %v1341_v62 = vsel %vm1310_vm3, %v1308_v9, %v3112_v8  ;;  %v1342_v53 = vsel %vm1310_vm3, %v1309_v39, %v3113_v44 }
  0xce   : > { %v3106_v56 = vpop.permute.xlu0 %3105  ;;  %v3121_v5 = vpop.permute.xlu1 %3120  ;;  %v1407_v34 = vsel %vm1277_vm2, %v5009_v26, %v3098_v33  ;;  %v1474_v40 = vpack.c.bf16 %v5013_v3, %v5012_v41  ;;  %v5014_v33 = vld [vmem:[#allocation30_spill] sm:$0xff] }
  0xcf   : > { %v3108_v4 = vunpack.i.h.bf16 %v3106_v56  ;;  %v3107_v25 = vunpack.i.l.bf16 %v3106_v56  ;;  %v3123_v58 = vunpack.i.h.bf16 %v3121_v5  ;;  %v3122_v23 = vunpack.i.l.bf16 %v3121_v5  ;;  %v5022_v3 = vld [vmem:[#allocation26_spill] sm:$0xff] }
  0xd0   : > { %3395 = vrot.lane.b32.xlu0 %v5008_v42, %s3473_s20  ;;  %v5017_v42 = vld [vmem:[#allocation28_spill] sm:$0xff] }
  0xd1   : > { %3410 = vrot.lane.b32.xlu1 %v3364_v10, %s3472_s19  ;;  %v1438_v61 = vsel %vm1310_vm3, %v1406_v27, %v3107_v25  ;;  %v1439_v60 = vsel %vm1310_vm3, %v1407_v34, %v3108_v4  ;;  %v5011_v10 = vld [vmem:[#allocation20_spill] sm:$0xff]  ;;  %v1374_v22 = vsel %vm1343_vm4, %v1341_v62, %v3122_v23  ;;  %v1375_v0 = vsel %vm1343_vm4, %v1342_v53, %v3123_v58  ;;  %v5018_v34 = vld [vmem:[#allocation27_spill] sm:$0xff] }
  0xd2   : > { %v3116_v37 = vpop.permute.xlu0 %3115  ;;  %v3131_v38 = vpop.permute.xlu1 %3130  ;;  %v1517_v51 = vpack.c.bf16 %v1375_v0, %v1374_v22  ;;  %v5019_v22 = vld [vmem:[#allocation5_spill] sm:$0xff]  ;;  %v5020_v0 = vld [vmem:[#allocation4_spill] sm:$0xff] }
  0xd3   : > { %v3118_v12 = vunpack.i.h.bf16 %v3116_v37  ;;  %v3117_v54 = vunpack.i.l.bf16 %v3116_v37  ;;  %v3133_v15 = vunpack.i.h.bf16 %v3131_v38  ;;  %v3132_v29 = vunpack.i.l.bf16 %v3131_v38 }
  0xd4   : > { %3405 = vrot.lane.b32.xlu0 %v5011_v10, %s3472_s19 }
  0xd5   : > { %3420 = vrot.lane.b32.xlu1 %v4375_v43, %s3474_s21  ;;  %v1470_v57 = vsel %vm1343_vm4, %v1438_v61, %v3117_v54  ;;  %v1471_v59 = vsel %vm1343_vm4, %v1439_v60, %v3118_v12  ;;  %v1287_v39 = vsel %vm1277_vm2, %v5015_v24, %v3133_v15  ;;  %v1286_v9 = vsel %vm1277_vm2, %v5016_v19, %v3132_v29  ;;  %v5025_v24 = vld [vmem:[#allocation24_spill] sm:$0xff]  ;;  %v5026_v19 = vld [vmem:[#allocation23_spill] sm:$0xff] }
  0xd6   : > { %v3126_v13 = vpop.permute.xlu0 %3125  ;;  %v3141_v14 = vpop.permute.xlu1 %3140  ;;  %v1518_v28 = vpack.c.bf16 %v1471_v59, %v1470_v57  ;;  %v5021_v57 = vpack.c.bf16 %v5019_v22, %v5020_v0 }
  0xd7   : > { %v3128_v16 = vunpack.i.h.bf16 %v3126_v13  ;;  %v3127_v43 = vunpack.i.l.bf16 %v3126_v13  ;;  %v3143_v44 = vunpack.i.h.bf16 %v3141_v14  ;;  %v3142_v8 = vunpack.i.l.bf16 %v3141_v14 }
  0xd8   : > { %3415 = vrot.lane.b32.xlu0 %v5014_v33, %s3474_s21  ;;  %1871 = vmatprep.mubr.bf16.mxu1 %v1518_v28 }
  0xd9   : > { %1872 = vmatmul.mubr.bf16.gmra.mrb[4].mxu1 %v1517_v51  ;;  %v1385_v26 = vsel %vm1277_vm2, %v5017_v42, %v3128_v16  ;;  %v1384_v17 = vsel %vm1277_vm2, %v5018_v34, %v3127_v43  ;;  %v1319_v38 = vsel %vm1310_vm3, %v1286_v9, %v3142_v8  ;;  %v1320_v62 = vsel %vm1310_vm3, %v1287_v39, %v3143_v44  ;;  %v5027_v42 = vld [vmem:[#allocation34_spill] sm:$0xff] }
  0xda   : > { %v3136_v56 = vpop.permute.xlu0 %3135  ;;  %v3151_v5 = vpop.permute.xlu1 %3150  ;;  %2835 = vmatprep.mubr.msk.bf16.mxu1 %vm1277_vm2, %v1474_v40  ;;  %v5023_v40 = vld [vmem:[#allocation25_spill] sm:$0xff] }
  0xdb   : > { %v3138_v4 = vunpack.i.h.bf16 %v3136_v56  ;;  %v3137_v25 = vunpack.i.l.bf16 %v3136_v56  ;;  %v3153_v58 = vunpack.i.h.bf16 %v3151_v5  ;;  %v3152_v23 = vunpack.i.l.bf16 %v3151_v5 }
  0xdc   : > { %v5024_v15 = vpack.c.bf16 %v5022_v3, %v5023_v40 }
  0xdd   : > { %v1416_v54 = vsel %vm1310_vm3, %v1384_v17, %v3137_v25  ;;  %v1417_v61 = vsel %vm1310_vm3, %v1385_v26, %v3138_v4  ;;  %v1352_v60 = vsel %vm1343_vm4, %v1319_v38, %v3152_v23  ;;  %v1353_v10 = vsel %vm1343_vm4, %v1320_v62, %v3153_v58  ;;  %v5028_v26 = vld [vmem:[#allocation33_spill] sm:$0xff]  ;;  %v5030_v17 = vld [vmem:[#allocation38_spill] sm:$0xff] }
  0xde   : > { %v3146_v27 = vpop.permute.xlu0 %3145  ;;  %v3161_v37 = vpop.permute.xlu1 %3160  ;;  %v1484_v33 = vpack.c.bf16 %v1353_v10, %v1352_v60  ;;  %v5029_v34 = vpack.c.bf16 %v5027_v42, %v5028_v26  ;;  %v5041_v42 = vld [vmem:[#allocation51_spill] sm:$0xff] }
  0xdf   : > { %v3148_v53 = vunpack.i.h.bf16 %v3146_v27  ;;  %v3147_v12 = vunpack.i.l.bf16 %v3146_v27  ;;  %v3163_v29 = vunpack.i.h.bf16 %v3161_v37  ;;  %v3162_v51 = vunpack.i.l.bf16 %v3161_v37  ;;  %v5031_v37 = vld [vmem:[#allocation37_spill] sm:$0xff] }
  0xe1   : > { %2836 = vmatmul.mubr.msk.bf16.vlgmr.msra.gmra.mrb[8].mxu1 %vm1277_vm2, %v5021_v57  ;;  %v1448_v59 = vsel %vm1343_vm4, %v1416_v54, %v3147_v12  ;;  %v1449_v13 = vsel %vm1343_vm4, %v1417_v61, %v3148_v53  ;;  %v1289_v39 = vsel %vm1277_vm2, %v5025_v24, %v3163_v29  ;;  %v1288_v9 = vsel %vm1277_vm2, %v5026_v19, %v3162_v51  ;;  %v5032_v12 = vld [vmem:[#allocation42_spill] sm:$0xff]  ;;  %v5033_v54 = vld [vmem:[#allocation41_spill] sm:$0xff] }
  0xe2   : > { %v3156_v14 = vpop.permute.xlu0 %3155  ;;  %v3171_v28 = vpop.permute.xlu1 %3170  ;;  %v1485_v41 = vpack.c.bf16 %v1449_v13, %v1448_v59  ;;  %2839 = vmatprep.mubr.msk.bf16.mxu1 %vm1277_vm2, %v5024_v15  ;;  %v5034_v61 = vpack.c.bf16 %v5032_v12, %v5033_v54 }
  0xe3   : > { %v3158_v16 = vunpack.i.h.bf16 %v3156_v14  ;;  %v3157_v43 = vunpack.i.l.bf16 %v3156_v14  ;;  %v3173_v44 = vunpack.i.h.bf16 %v3171_v28  ;;  %v3172_v8 = vunpack.i.l.bf16 %v3171_v28 }
  0xe4   : > { %1783 = vmatprep.mubr.bf16.mxu0 %v1485_v41 }
  0xe5   : > { %1784 = vmatmul.mubr.bf16.gmra.mrb[16].mxu0 %v1484_v33  ;;  %v1387_v27 = vsel %vm1277_vm2, %v5030_v17, %v3158_v16  ;;  %v1386_v38 = vsel %vm1277_vm2, %v5031_v37, %v3157_v43  ;;  %v1321_v60 = vsel %vm1310_vm3, %v1288_v9, %v3172_v8  ;;  %v1322_v10 = vsel %vm1310_vm3, %v1289_v39, %v3173_v44  ;;  %v5038_v9 = vld [vmem:[#allocation36_spill] sm:$0xff]  ;;  %v5039_v8 = vld [vmem:[#allocation35_spill] sm:$0xff] }
  0xe6   : > { %v3166_v56 = vpop.permute.xlu0 %3165  ;;  %v3181_v5 = vpop.permute.xlu1 %3180 }
  0xe7   : > { %v3168_v4 = vunpack.i.h.bf16 %v3166_v56  ;;  %v3167_v25 = vunpack.i.l.bf16 %v3166_v56  ;;  %v3183_v58 = vunpack.i.h.bf16 %v3181_v5  ;;  %v3182_v23 = vunpack.i.l.bf16 %v3181_v5  ;;  %v5035_v56 = vld [vmem:[#allocation45_spill] sm:$0xff]  ;;  %v5036_v5 = vld [vmem:[#allocation44_spill] sm:$0xff] }
  0xe8   : > { %v5037_v24 = vpack.c.bf16 %v5035_v56, %v5036_v5  ;;  %v5048_v5 = vpack.c.bf16 %v4093_v35, %v4090_v31  ;;  %v5051_v35 = vld [vmem:[#allocation58_spill] sm:$0xff] }
  0xe9   : > { %2840 = vmatmul.mubr.msk.bf16.gmra.mrb[12].mxu1 %vm1277_vm2, %v5029_v34  ;;  %v1418_v57 = vsel %vm1310_vm3, %v1386_v38, %v3167_v25  ;;  %v1419_v59 = vsel %vm1310_vm3, %v1387_v27, %v3168_v4  ;;  %v1354_v13 = vsel %vm1343_vm4, %v1321_v60, %v3182_v23  ;;  %v1355_v14 = vsel %vm1343_vm4, %v1322_v10, %v3183_v58  ;;  %v5040_v23 = vld [vmem:[#allocation52_spill] sm:$0xff]  ;;  %v5043_v38 = vld [vmem:[#allocation47_spill] sm:$0xff] }
  0xea   : > { %v3176_v62 = vpop.permute.xlu0 %3175  ;;  %v3191_v53 = vpop.permute.xlu1 %3190  ;;  %2843 = vmatprep.mubr.msk.bf16.mxu1 %vm1277_vm2, %v5034_v61  ;;  %v1487_v33 = vpack.c.bf16 %v1355_v14, %v1354_v13  ;;  %v5042_v26 = vpack.c.bf16 %v5040_v23, %v5041_v42 }
  0xeb   : > { %v3178_v22 = vunpack.i.h.bf16 %v3176_v62  ;;  %v3177_v0 = vunpack.i.l.bf16 %v3176_v62  ;;  %v3193_v29 = vunpack.i.h.bf16 %v3191_v53  ;;  %v3192_v51 = vunpack.i.l.bf16 %v3191_v53  ;;  %v5044_v53 = vld [vmem:[#allocation43_spill] sm:$0xff] }
  0xed   : > { %v1450_v28 = vsel %vm1343_vm4, %v1418_v57, %v3177_v0  ;;  %v1451_v41 = vsel %vm1343_vm4, %v1419_v59, %v3178_v22  ;;  %v1291_v44 = vsel %vm1277_vm2, %v5038_v9, %v3193_v29  ;;  %v1290_v4 = vsel %vm1277_vm2, %v5039_v8, %v3192_v51 }
  0xee   : > { %v3186_v3 = vpop.permute.xlu0 %3185  ;;  %v3201_v40 = vpop.permute.xlu1 %3200  ;;  %v1488_v15 = vpack.c.bf16 %v1451_v41, %v1450_v28 }
  0xef   : > { %v3188_v16 = vunpack.i.h.bf16 %v3186_v3  ;;  %v3187_v43 = vunpack.i.l.bf16 %v3186_v3  ;;  %v3203_v25 = vunpack.i.h.bf16 %v3201_v40  ;;  %v3202_v58 = vunpack.i.l.bf16 %v3201_v40  ;;  %v5045_v3 = vld [vmem:[#allocation54_spill] sm:$0xff]  ;;  %v5046_v40 = vld [vmem:[#allocation53_spill] sm:$0xff] }
  0xf0   : > { %1791 = vmatprep.mubr.bf16.mxu0 %v1488_v15  ;;  %v5047_v15 = vpack.c.bf16 %v5045_v3, %v5046_v40  ;;  %v5056_v40 = vld [vmem:[#allocation18_spill] sm:$0xff] }
  0xf1   : > { %1792 = vmatmul.mubr.bf16.gmra.mrb[20].mxu0 %v1487_v33  ;;  %2844 = vmatmul.mubr.msk.bf16.gmra.mrb[16].mxu1 %vm1277_vm2, %v5037_v24  ;;  %v1389_v62 = vsel %vm1277_vm2, %v5043_v38, %v3188_v16  ;;  %v1388_v12 = vsel %vm1277_vm2, %v5044_v53, %v3187_v43  ;;  %v1323_v60 = vsel %vm1310_vm3, %v1290_v4, %v3202_v58  ;;  %v5050_v4 = vld [vmem:[#allocation39_spill] sm:$0xff] }
  0xf2   : > { %v3196_v39 = vpop.permute.xlu0 %3195  ;;  %v3211_v19 = vpop.permute.xlu1 %3210  ;;  %2847 = vmatprep.mubr.msk.bf16.mxu1 %vm1277_vm2, %v5042_v26  ;;  %v1324_v10 = vsel %vm1310_vm3, %v1291_v44, %v3203_v25  ;;  %v5049_v44 = vld [vmem:[#allocation40_spill] sm:$0xff]  ;;  %v5053_v38 = vpack.c.bf16 %v4106_v50, %v4103_v32 }
  0xf3   : > { %v3198_v34 = vunpack.i.h.bf16 %v3196_v39  ;;  %v3197_v17 = vunpack.i.l.bf16 %v3196_v39  ;;  %v3213_v27 = vunpack.i.h.bf16 %v3211_v19  ;;  %v3212_v37 = vunpack.i.l.bf16 %v3211_v19 }
  0xf5   : > { %v1420_v57 = vsel %vm1310_vm3, %v1388_v12, %v3197_v17  ;;  %v1421_v59 = vsel %vm1310_vm3, %v1389_v62, %v3198_v34  ;;  %v1356_v13 = vsel %vm1343_vm4, %v1323_v60, %v3212_v37  ;;  %v1357_v14 = vsel %vm1343_vm4, %v1324_v10, %v3213_v27  ;;  %v5052_v27 = vld [vmem:[#allocation57_spill] sm:$0xff] }
  0xf6   : > { %v3206_v54 = vpop.permute.xlu0 %3205  ;;  %v3221_v61 = vpop.permute.xlu1 %3220  ;;  %v1490_v56 = vpack.c.bf16 %v1357_v14, %v1356_v13  ;;  %v5054_v10 = vpack.c.bf16 %v4144_v7, %v4141_v45  ;;  %v5055_v7 = vld [vmem:[#allocation17_spill] sm:$0xff] }
  0xf7   : > { %v3208_v22 = vunpack.i.h.bf16 %v3206_v54  ;;  %v3207_v0 = vunpack.i.l.bf16 %v3206_v54  ;;  %v3223_v16 = vunpack.i.h.bf16 %v3221_v61  ;;  %v3222_v43 = vunpack.i.l.bf16 %v3221_v61 }
  0xf9   : > { %v1452_v28 = vsel %vm1343_vm4, %v1420_v57, %v3207_v0  ;;  %v1453_v41 = vsel %vm1343_vm4, %v1421_v59, %v3208_v22  ;;  %2848 = vmatmul.mubr.msk.bf16.gmra.mrb[20].mxu1 %vm1277_vm2, %v5047_v15  ;;  %v1293_v8 = vsel %vm1277_vm2, %v5049_v44, %v3223_v16  ;;  %v1292_v25 = vsel %vm1277_vm2, %v5050_v4, %v3222_v43 }
  0xfa   : > { %v3216_v29 = vpop.permute.xlu0 %3215  ;;  %v3231_v51 = vpop.permute.xlu1 %3230  ;;  %v1491_v33 = vpack.c.bf16 %v1453_v41, %v1452_v28  ;;  %2851 = vmatprep.mubr.msk.bf16.mxu1 %vm1277_vm2, %v5048_v5  ;;  %v1510_v15 = vpack.c.bf16 %v5056_v40, %v5055_v7  ;;  %v5068_v40 = vld [vmem:[#allocation13_spill] sm:$0xff] }
  0xfb   : > { %v3218_v24 = vunpack.i.h.bf16 %v3216_v29  ;;  %v3217_v39 = vunpack.i.l.bf16 %v3216_v29  ;;  %v3233_v58 = vunpack.i.h.bf16 %v3231_v51  ;;  %v3232_v23 = vunpack.i.l.bf16 %v3231_v51 }
  0xfc   : > { %1799 = vmatprep.mubr.bf16.mxu0 %v1491_v33  ;;  %v5057_v33 = vpack.c.bf16 %v4153_v47, %v4150_v6  ;;  %v5061_v6 = vld [vmem:[#allocation16_spill] sm:$0xff] }
  0xfd   : > { %1800 = vmatmul.mubr.bf16.gmra.mrb[24].mxu0 %v1490_v56  ;;  %v1391_v17 = vsel %vm1277_vm2, %v5051_v35, %v3218_v24  ;;  %v1390_v37 = vsel %vm1277_vm2, %v5052_v27, %v3217_v39  ;;  %v1325_v12 = vsel %vm1310_vm3, %v1292_v25, %v3232_v23  ;;  %v1326_v54 = vsel %vm1310_vm3, %v1293_v8, %v3233_v58  ;;  %v5058_v56 = vld [vmem:[#allocation48_spill] sm:$0xff]  ;;  %v5059_v24 = vld [vmem:[#allocation46_spill] sm:$0xff]  ;;  %v5060_v58 = vld [vmem:[#allocation15_spill] sm:$0xff] }
  0xfe   : > { %v3226_v19 = vpop.permute.xlu0 %3225  ;;  %v3241_v9 = vpop.permute.xlu1 %3240  ;;  %v1513_v47 = vpack.c.bf16 %v5061_v6, %v5060_v58  ;;  %v5062_v23 = vld [vmem:[#allocation31_spill] sm:$0xff]  ;;  %v5065_v27 = vld [vmem:[#allocation32_spill] sm:$0xff] }
  0xff   : > { %v3228_v42 = vunpack.i.h.bf16 %v3226_v19  ;;  %v3227_v26 = vunpack.i.l.bf16 %v3226_v19  ;;  %v3243_v34 = vunpack.i.h.bf16 %v3241_v9  ;;  %v3242_v31 = vunpack.i.l.bf16 %v3241_v9 }
 0x101   : > { %2852 = vmatmul.mubr.msk.bf16.gmra.mrb[24].mxu1 %vm1277_vm2, %v5053_v38  ;;  %v1422_v22 = vsel %vm1310_vm3, %v1390_v37, %v3227_v26  ;;  %v1423_v0 = vsel %vm1310_vm3, %v1391_v17, %v3228_v42  ;;  %v1358_v50 = vsel %vm1343_vm4, %v1325_v12, %v3242_v31  ;;  %v1359_v32 = vsel %vm1343_vm4, %v1326_v54, %v3243_v34  ;;  %v5063_v26 = vld [vmem:[#allocation60_spill] sm:$0xff]  ;;  %v5064_v31 = vld [vmem:[#allocation59_spill] sm:$0xff]  ;;  %v5066_v38 = vld [vmem:[#allocation29_spill] sm:$0xff] }
 0x102   : > { %v3236_v62 = vpop.permute.xlu0 %3235  ;;  %v3251_v53 = vpop.permute.xlu1 %3250  ;;  %2855 = vmatprep.mubr.msk.bf16.mxu1 %vm1277_vm2, %v5054_v10  ;;  %v1493_v45 = vpack.c.bf16 %v1359_v32, %v1358_v50  ;;  %v664_v42 = vrot.slane %v5062_v23, 2  ;;  %v665_v37 = vrot.slane %v5065_v27, 2 }
 0x103   : > { %v3238_v61 = vunpack.i.h.bf16 %v3236_v62  ;;  %v3237_v60 = vunpack.i.l.bf16 %v3236_v62  ;;  %v3253_v41 = vunpack.i.h.bf16 %v3251_v53  ;;  %v3252_v3 = vunpack.i.l.bf16 %v3251_v53 }
 0x104   : > { %v5067_v62 = vunpack.c.l.bf16 %v5066_v38 }
 0x105   : > { %v1454_v57 = vsel %vm1343_vm4, %v1422_v22, %v3237_v60  ;;  %v1455_v59 = vsel %vm1343_vm4, %v1423_v0, %v3238_v61  ;;  %v1295_v5 = vsel %vm1277_vm2, %v5058_v56, %v3253_v41  ;;  %v1294_v39 = vsel %vm1277_vm2, %v5059_v24, %v3252_v3 }
 0x106   : > { %v3246_v13 = vpop.permute.xlu0 %3245  ;;  %v3261_v14 = vpop.permute.xlu1 %3260  ;;  %v1494_v28 = vpack.c.bf16 %v1455_v59, %v1454_v57  ;;  %v667_v53 = vrot.slane %v5067_v62, 2 }
 0x107   : > { %v3248_v29 = vunpack.i.h.bf16 %v3246_v13  ;;  %v3247_v51 = vunpack.i.l.bf16 %v3246_v13  ;;  %v3263_v19 = vunpack.i.h.bf16 %v3261_v14  ;;  %v3262_v9 = vunpack.i.l.bf16 %v3261_v14 }
 0x108   : > { %1807 = vmatprep.mubr.bf16.mxu0 %v1494_v28  ;;  %v666_v28 = vsel %vm530_vm0, %v664_v42, %v665_v37 }
 0x109   : > { %1808 = vmatmul.mubr.bf16.gmra.mrb[28].mxu0 %v1493_v45  ;;  %2856 = vmatmul.mubr.msk.bf16.gmra.mrb[28].mxu1 %vm1277_vm2, %v5057_v33  ;;  %v1393_v34 = vsel %vm1277_vm2, %v5063_v26, %v3248_v29  ;;  %v1392_v35 = vsel %vm1277_vm2, %v5064_v31, %v3247_v51  ;;  %v1327_v12 = vsel %vm1310_vm3, %v1294_v39, %v3262_v9  ;;  %v5072_v39 = vld [vmem:[#allocation49_spill] sm:$0xff] }
 0x10a   : > { %v3256_v16 = vpop.permute.xlu0 %3255  ;;  %v3271_v43 = vpop.permute.xlu1 %3270  ;;  %2859 = vmatprep.mubr.msk.bf16.mxu1 %vm1277_vm2, %v1510_v15  ;;  %v1328_v54 = vsel %vm1310_vm3, %v1295_v5, %v3263_v19  ;;  %v5069_v15 = vld [vmem:[#allocation12_spill] sm:$0xff]  ;;  %v668_v51 = vsel %vm530_vm0, %v665_v37, %v667_v53  ;;  %v5071_v5 = vld [vmem:[#allocation50_spill] sm:$0xff] }
 0x10b   : > { %v3258_v44 = vunpack.i.h.bf16 %v3256_v16  ;;  %v3257_v8 = vunpack.i.l.bf16 %v3256_v16  ;;  %v3273_v4 = vunpack.i.h.bf16 %v3271_v43  ;;  %v3272_v25 = vunpack.i.l.bf16 %v3271_v43 }
 0x10c   : > { %v5070_v29 = vpack.c.bf16 %v5068_v40, %v5069_v15  ;;  %v1519_v56 = vpack.c.bf16 %v668_v51, %v666_v28 }
 0x10d   : > { %v1424_v22 = vsel %vm1310_vm3, %v1392_v35, %v3257_v8  ;;  %v1425_v0 = vsel %vm1310_vm3, %v1393_v34, %v3258_v44  ;;  %v1360_v50 = vsel %vm1343_vm4, %v1327_v12, %v3272_v25  ;;  %v1361_v32 = vsel %vm1343_vm4, %v1328_v54, %v3273_v4 }
 0x10e   : > { %v3266_v17 = vpop.permute.xlu0 %3265  ;;  %v1496_v7 = vpack.c.bf16 %v1361_v32, %v1360_v50  ;;  %v5073_v32 = vld [vmem:[#allocation56_spill] sm:$0xff] }
 0x10f   : > { %v3268_v61 = vunpack.i.h.bf16 %v3266_v17  ;;  %v3267_v60 = vunpack.i.l.bf16 %v3266_v17  ;;  %v3281_v10 = vpop.permute.xlu1 %3280 }
 0x110   : > { %v3283_v41 = vunpack.i.h.bf16 %v3281_v10  ;;  %v3282_v3 = vunpack.i.l.bf16 %v3281_v10 }
 0x111   : > { %v1456_v57 = vsel %vm1343_vm4, %v1424_v22, %v3267_v60  ;;  %v1457_v59 = vsel %vm1343_vm4, %v1425_v0, %v3268_v61  ;;  %2860 = vmatmul.mubr.msk.bf16.gmra.mrb[32].mxu1 %vm1277_vm2, %v1513_v47 }
 0x112   : > { %v3276_v13 = vpop.permute.xlu0 %3275  ;;  %v1497_v14 = vpack.c.bf16 %v1457_v59, %v1456_v57  ;;  %2863 = vmatprep.mubr.msk.bf16.mxu1 %vm1277_vm2, %v5070_v29  ;;  %v1297_v24 = vsel %vm1277_vm2, %v5071_v5, %v3283_v41  ;;  %v1296_v19 = vsel %vm1277_vm2, %v5072_v39, %v3282_v3  ;;  %v5074_v59 = vld [vmem:[#allocation55_spill] sm:$0xff] }
 0x113   : > { %v3291_v45 = vpop.permute.xlu1 %3290  ;;  %v3278_v33 = vunpack.i.h.bf16 %v3276_v13  ;;  %v3277_v16 = vunpack.i.l.bf16 %v3276_v13 }
 0x114   : > { %1815 = vmatprep.mubr.bf16.mxu0 %v1497_v14  ;;  %v3293_v9 = vunpack.i.h.bf16 %v3291_v45  ;;  %v3292_v44 = vunpack.i.l.bf16 %v3291_v45 }
 0x115   : > { %1816 = vmatmul.mubr.bf16.gmra.mrb[32].mxu0 %v1496_v7  ;;  %v1395_v47 = vsel %vm1277_vm2, %v4187_v63, %v3278_v33  ;;  %v1394_v23 = vsel %vm1277_vm2, %v4184_v52, %v3277_v16 }
 0x116   : > { %v3286_v43 = vpop.permute.xlu0 %3285  ;;  %v1329_v26 = vsel %vm1310_vm3, %v1296_v19, %v3292_v44  ;;  %v1330_v34 = vsel %vm1310_vm3, %v1297_v24, %v3293_v9 }
 0x117   : > { %v3301_v8 = vpop.permute.xlu1 %3300  ;;  %v3288_v4 = vunpack.i.h.bf16 %v3286_v43  ;;  %v3287_v25 = vunpack.i.l.bf16 %v3286_v43 }
 0x118   : > { %v3303_v58 = vunpack.i.h.bf16 %v3301_v8  ;;  %v3302_v6 = vunpack.i.l.bf16 %v3301_v8 }
 0x119   : > { %2864 = vmatmul.mubr.msk.bf16.gmra.mrb[36].mxu1 %vm1277_vm2, %v1519_v56  ;;  %v1426_v27 = vsel %vm1310_vm3, %v1394_v23, %v3287_v25  ;;  %v1427_v37 = vsel %vm1310_vm3, %v1395_v47, %v3288_v4 }
 0x11a   : > { %v3296_v42 = vpop.permute.xlu0 %3295  ;;  %v1362_v38 = vsel %vm1343_vm4, %v1329_v26, %v3302_v6  ;;  %v1363_v63 = vsel %vm1343_vm4, %v1330_v34, %v3303_v58 }
 0x11b   : > { %v3298_v31 = vunpack.i.h.bf16 %v3296_v42  ;;  %v3297_v35 = vunpack.i.l.bf16 %v3296_v42  ;;  %v3311_v17 = vpop.permute.xlu1 %3310  ;;  %v1499_v10 = vpack.c.bf16 %v1363_v63, %v1362_v38 }
 0x11c   : > { %v3313_v54 = vunpack.i.h.bf16 %v3311_v17  ;;  %v3312_v61 = vunpack.i.l.bf16 %v3311_v17 }
 0x11d   : > { %v1458_v52 = vsel %vm1343_vm4, %v1426_v27, %v3297_v35  ;;  %v1459_v62 = vsel %vm1343_vm4, %v1427_v37, %v3298_v31 }
 0x11e   : > { %v3306_v53 = vpop.permute.xlu0 %3305  ;;  %v1500_v12 = vpack.c.bf16 %v1459_v62, %v1458_v52  ;;  %v1299_v57 = vsel %vm1277_vm2, %v5073_v32, %v3313_v54  ;;  %v1298_v13 = vsel %vm1277_vm2, %v5074_v59, %v3312_v61 }
 0x11f   : > { %v3321_v60 = vpop.permute.xlu1 %3320  ;;  %v3308_v22 = vunpack.i.h.bf16 %v3306_v53  ;;  %v3307_v0 = vunpack.i.l.bf16 %v3306_v53 }
 0x120   : > { %1823 = vmatprep.mubr.bf16.mxu0 %v1500_v12  ;;  %v3323_v14 = vunpack.i.h.bf16 %v3321_v60  ;;  %v3322_v28 = vunpack.i.l.bf16 %v3321_v60 }
 0x121   : > { %1824 = vmatmul.mubr.bf16.gmra.mrb[36].mxu0 %v1499_v10  ;;  %v1397_v15 = vsel %vm1277_vm2, %v4234_v21, %v3308_v22  ;;  %v1396_v29 = vsel %vm1277_vm2, %v4231_v2, %v3307_v0 }
 0x122   : > { %v3316_v50 = vpop.permute.xlu0 %3315  ;;  %v1331_v33 = vsel %vm1310_vm3, %v1298_v13, %v3322_v28  ;;  %v1332_v16 = vsel %vm1310_vm3, %v1299_v57, %v3323_v14 }
 0x123   : > { %v3331_v41 = vpop.permute.xlu1 %3330  ;;  %v3318_v3 = vunpack.i.h.bf16 %v3316_v50  ;;  %v3317_v45 = vunpack.i.l.bf16 %v3316_v50 }
 0x124   : > { %v3333_v7 = vunpack.i.h.bf16 %v3331_v41  ;;  %v3332_v40 = vunpack.i.l.bf16 %v3331_v41 }
 0x125   : > { %v1428_v24 = vsel %vm1310_vm3, %v1396_v29, %v3317_v45  ;;  %v1429_v39 = vsel %vm1310_vm3, %v1397_v15, %v3318_v3 }
 0x126   : > { %v3326_v51 = vpop.permute.xlu0 %3325  ;;  %v1364_v19 = vsel %vm1343_vm4, %v1331_v33, %v3332_v40  ;;  %v1365_v9 = vsel %vm1343_vm4, %v1332_v16, %v3333_v7 }
 0x127   : > { %v3328_v43 = vunpack.i.h.bf16 %v3326_v51  ;;  %v3327_v56 = vunpack.i.l.bf16 %v3326_v51  ;;  %v3341_v5 = vpop.permute.xlu1 %3340  ;;  %v1502_v6 = vpack.c.bf16 %v1365_v9, %v1364_v19 }
 0x128   : > { %v3343_v4 = vunpack.i.h.bf16 %v3341_v5  ;;  %v3342_v25 = vunpack.i.l.bf16 %v3341_v5 }
 0x129   : > { %v1460_v21 = vsel %vm1343_vm4, %v1428_v24, %v3327_v56  ;;  %v1461_v2 = vsel %vm1343_vm4, %v1429_v39, %v3328_v43 }
 0x12a   : > { %v3336_v44 = vpop.permute.xlu0 %3335  ;;  %v1503_v8 = vpack.c.bf16 %v1461_v2, %v1460_v21  ;;  %v1301_v26 = vsel %vm1277_vm2, %v4063_v20, %v3343_v4  ;;  %v1300_v34 = vsel %vm1277_vm2, %v4061_v55, %v3342_v25 }
 0x12b   : > { %v3351_v58 = vpop.permute.xlu1 %3350  ;;  %v3338_v47 = vunpack.i.h.bf16 %v3336_v44  ;;  %v3337_v23 = vunpack.i.l.bf16 %v3336_v44 }
 0x12c   : > { %1831 = vmatprep.mubr.bf16.mxu0 %v1503_v8  ;;  %v3353_v31 = vunpack.i.h.bf16 %v3351_v58  ;;  %v3352_v35 = vunpack.i.l.bf16 %v3351_v58 }
 0x12d   : > { %1832 = vmatmul.mubr.bf16.gmra.mrb[40].mxu0 %v1502_v6  ;;  %v1399_v52 = vsel %vm1277_vm2, %v4284_v11, %v3338_v47  ;;  %v1398_v62 = vsel %vm1277_vm2, %v4281_v46, %v3337_v23 }
 0x12e   : > { %v3346_v42 = vpop.permute.xlu0 %3345  ;;  %v1333_v12 = vsel %vm1310_vm3, %v1300_v34, %v3352_v35  ;;  %v1334_v20 = vsel %vm1310_vm3, %v1301_v26, %v3353_v31 }
 0x12f   : > { %v3361_v17 = vpop.permute.xlu1 %3360  ;;  %v3348_v27 = vunpack.i.h.bf16 %v3346_v42  ;;  %v3347_v37 = vunpack.i.l.bf16 %v3346_v42 }
 0x130   : > { %v3363_v38 = vunpack.i.h.bf16 %v3361_v17  ;;  %v3362_v63 = vunpack.i.l.bf16 %v3361_v17 }
 0x131   : > { %v1430_v60 = vsel %vm1310_vm3, %v1398_v62, %v3347_v37  ;;  %v1431_v10 = vsel %vm1310_vm3, %v1399_v52, %v3348_v27 }
 0x132   : > { %v3356_v53 = vpop.permute.xlu0 %3355  ;;  %v1366_v22 = vsel %vm1343_vm4, %v1333_v12, %v3362_v63  ;;  %v1367_v0 = vsel %vm1343_vm4, %v1334_v20, %v3363_v38  ;;  %v5076_v20 = vld [vmem:[#allocation10_spill] sm:$0xff] }
 0x133   : > { %v3358_v54 = vunpack.i.h.bf16 %v3356_v53  ;;  %v3357_v55 = vunpack.i.l.bf16 %v3356_v53  ;;  %v3371_v61 = vpop.permute.xlu1 %3370  ;;  %v1505_v14 = vpack.c.bf16 %v1367_v0, %v1366_v22  ;;  %v5075_v53 = vld [vmem:[#allocation11_spill] sm:$0xff] }
 0x134   : > { %v3373_v57 = vunpack.i.h.bf16 %v3371_v61  ;;  %v3372_v59 = vunpack.i.l.bf16 %v3371_v61 }
 0x135   : > { %v1462_v11 = vsel %vm1343_vm4, %v1430_v60, %v3357_v55  ;;  %v1463_v46 = vsel %vm1343_vm4, %v1431_v10, %v3358_v54 }
 0x136   : > { %v3366_v50 = vpop.permute.xlu0 %3365  ;;  %v1506_v32 = vpack.c.bf16 %v1463_v46, %v1462_v11  ;;  %v1303_v45 = vsel %vm1277_vm2, %v4112_v18, %v3373_v57  ;;  %v1302_v7 = vsel %vm1277_vm2, %v4110_v30, %v3372_v59 }
 0x137   : > { %v3381_v13 = vpop.permute.xlu1 %3380  ;;  %v3368_v28 = vunpack.i.h.bf16 %v3366_v50  ;;  %v3367_v41 = vunpack.i.l.bf16 %v3366_v50 }
 0x138   : > { %1839 = vmatprep.mubr.bf16.mxu0 %v1506_v32  ;;  %v3383_v40 = vunpack.i.h.bf16 %v3381_v13  ;;  %v3382_v15 = vunpack.i.l.bf16 %v3381_v13 }
 0x139   : > { %1840 = vmatmul.mubr.bf16.gmra.mrb[44].mxu0 %v1505_v14  ;;  %v1401_v56 = vsel %vm1277_vm2, %v4334_v48, %v3368_v28  ;;  %v1400_v5 = vsel %vm1277_vm2, %v4331_v49, %v3367_v41 }
 0x13a   : > { %v3376_v3 = vpop.permute.xlu0 %3375  ;;  %v1335_v39 = vsel %vm1310_vm3, %v1302_v7, %v3382_v15  ;;  %v1336_v18 = vsel %vm1310_vm3, %v1303_v45, %v3383_v40 }
 0x13b   : > { %v3391_v29 = vpop.permute.xlu1 %3390  ;;  %v3378_v51 = vunpack.i.h.bf16 %v3376_v3  ;;  %v3377_v33 = vunpack.i.l.bf16 %v3376_v3 }
 0x13c   : > { %v3393_v16 = vunpack.i.h.bf16 %v3391_v29  ;;  %v3392_v43 = vunpack.i.l.bf16 %v3391_v29 }
 0x13d   : > { %v1432_v21 = vsel %vm1310_vm3, %v1400_v5, %v3377_v33  ;;  %v1433_v2 = vsel %vm1310_vm3, %v1401_v56, %v3378_v51 }
 0x13e   : > { %v3386_v24 = vpop.permute.xlu0 %3385  ;;  %v1368_v44 = vsel %vm1343_vm4, %v1335_v39, %v3392_v43  ;;  %v1369_v8 = vsel %vm1343_vm4, %v1336_v18, %v3393_v16 }
 0x13f   : > { %v3388_v19 = vunpack.i.h.bf16 %v3386_v24  ;;  %v3387_v30 = vunpack.i.l.bf16 %v3386_v24  ;;  %v3401_v9 = vpop.permute.xlu1 %3400  ;;  %v1508_v23 = vpack.c.bf16 %v1369_v8, %v1368_v44 }
 0x140   : > { %v3403_v58 = vunpack.i.h.bf16 %v3401_v9  ;;  %v3402_v6 = vunpack.i.l.bf16 %v3401_v9 }
 0x141   : > { %v1464_v48 = vsel %vm1343_vm4, %v1432_v21, %v3387_v30  ;;  %v1465_v49 = vsel %vm1343_vm4, %v1433_v2, %v3388_v19 }
 0x142   : > { %v3396_v4 = vpop.permute.xlu0 %3395  ;;  %v1509_v25 = vpack.c.bf16 %v1465_v49, %v1464_v48  ;;  %v1305_v31 = vsel %vm1277_vm2, %v4119_v36, %v3403_v58  ;;  %v1304_v35 = vsel %vm1277_vm2, %v4117_v1, %v3402_v6 }
 0x143   : > { %v3411_v47 = vpop.permute.xlu1 %3410  ;;  %v3398_v42 = vunpack.i.h.bf16 %v3396_v4  ;;  %v3397_v26 = vunpack.i.l.bf16 %v3396_v4 }
 0x144   : > { %1847 = vmatprep.mubr.bf16.mxu0 %v1509_v25  ;;  %v3413_v17 = vunpack.i.h.bf16 %v3411_v47  ;;  %v3412_v27 = vunpack.i.l.bf16 %v3411_v47 }
 0x145   : > { %1848 = vmatmul.mubr.bf16.gmra.mrb[48].mxu0 %v1508_v23  ;;  %v1403_v12 = vsel %vm1277_vm2, %v5075_v53, %v3398_v42  ;;  %v1402_v54 = vsel %vm1277_vm2, %v5076_v20, %v3397_v26  ;;  %v4665_v26 = vld [vmem:[%s4870_s2] ss:$0 sm:$0xff] }
 0x146   : > { %v3406_v34 = vpop.permute.xlu0 %3405  ;;  %v1337_v61 = vsel %vm1310_vm3, %v1304_v35, %v3412_v27  ;;  %v1338_v36 = vsel %vm1310_vm3, %v1305_v31, %v3413_v17 }
 0x147   : > { %v3421_v37 = vpop.permute.xlu1 %3420  ;;  %v3408_v38 = vunpack.i.h.bf16 %v3406_v34  ;;  %v3407_v63 = vunpack.i.l.bf16 %v3406_v34 }
 0x148   : > { %v3423_v52 = vunpack.i.h.bf16 %v3421_v37  ;;  %v3422_v62 = vunpack.i.l.bf16 %v3421_v37 }
 0x149   : > { %v1434_v10 = vsel %vm1310_vm3, %v1402_v54, %v3407_v63  ;;  %v1435_v22 = vsel %vm1310_vm3, %v1403_v12, %v3408_v38 }
 0x14a   : > { %v3416_v55 = vpop.permute.xlu0 %3415  ;;  %v1370_v0 = vsel %vm1343_vm4, %v1337_v61, %v3422_v62  ;;  %v1371_v11 = vsel %vm1343_vm4, %v1338_v36, %v3423_v52 }
 0x14b   : > { %v3418_v60 = vunpack.i.h.bf16 %v3416_v55  ;;  %v3417_v1 = vunpack.i.l.bf16 %v3416_v55  ;;  %v1511_v57 = vpack.c.bf16 %v1371_v11, %v1370_v0 }
 0x14d   : > { %v1466_v46 = vsel %vm1343_vm4, %v1434_v10, %v3417_v1  ;;  %v1467_v50 = vsel %vm1343_vm4, %v1435_v22, %v3418_v60 }
 0x14e   : > { %v1512_v32 = vpack.c.bf16 %v1467_v50, %v1466_v46 }
 0x150   : > { %1855 = vmatprep.mubr.bf16.mxu0 %v1512_v32 }
 0x151   : > { %1856 = vmatmul.mubr.bf16.gmra.mrb[52].mxu0 %v1511_v57 }
 0x170   : > { %v2675_v59 = vpop.f32.mrb[0].mxu0 }
 0x171   : > { %v2676_v13 = vpop.f32.mrb[1].mxu0 }
 0x172   : > { %v2677_v14 = vadd.f32 %v2676_v13, %v2675_v59  ;;  %v2678_v28 = vpop.f32.mrb[2].mxu0 }
 0x173   : > { %v2679_v41 = vpop.f32.mrb[3].mxu0 }
 0x174   : > { %v2680_v3 = vadd.f32 %v2679_v41, %v2678_v28  ;;  %v1754_v35 = vadd.f32 %v2677_v14, %v4665_v26 }
 0x176   : > { %v1757_v52 = vadd.f32 %v2680_v3, %v4665_v26 }
 0x17c   : > { %v2681_v45 = vpop.f32.mrb[4].mxu0 }
 0x17d   : > { %v2682_v7 = vpop.f32.mrb[5].mxu0 }
 0x17e   : > { %v2683_v40 = vadd.f32 %v2682_v7, %v2681_v45  ;;  %v2684_v15 = vpop.f32.mrb[6].mxu0 }
 0x17f   : > { %v2685_v29 = vpop.f32.mrb[7].mxu0 }
 0x180   : > { %v2686_v51 = vadd.f32 %v2685_v29, %v2684_v15  ;;  %v1762_v34 = vadd.f32 %v2683_v40, %v4665_v26 }
 0x182   : > { %v1765_v37 = vadd.f32 %v2686_v51, %v4665_v26 }
 0x188   : > { %v2687_v33 = vpop.f32.mrb[8].mxu0 }
 0x189   : > { %v2688_v16 = vpop.f32.mrb[9].mxu0 }
 0x18a   : > { %v2689_v43 = vadd.f32 %v2688_v16, %v2687_v33  ;;  %v2690_v56 = vpop.f32.mrb[10].mxu0 }
 0x18b   : > { %v2691_v5 = vpop.f32.mrb[11].mxu0 }
 0x18c   : > { %v2692_v24 = vadd.f32 %v2691_v5, %v2690_v56  ;;  %v1770_v57 = vadd.f32 %v2689_v43, %v4665_v26  ;;  %v4684_v43 = vld [vmem:[%s4871_s3] sm:$0xff] }
 0x18d   : > { %2821 = vmatprep.mubr.msk.f32.mxu1 %vm1277_vm2, %v4684_v43 }
 0x18e   : > { %v1773_v3 = vadd.f32 %v2692_v24, %v4665_v26 }
 0x194   : > { %v2759_v39 = vpop.f32.mrb[0].mxu1 }
 0x195   : > { %v2760_v18 = vpop.f32.mrb[1].mxu1 }
 0x196   : > { %v4654_v19 = vadd.f32 %v2760_v18, %v2759_v39  ;;  %v2762_v30 = vpop.f32.mrb[2].mxu1 }
 0x197   : > { %v2763_v9 = vpop.f32.mrb[3].mxu1 }
 0x198   : > { %v4656_v21 = vadd.f32 %v2763_v9, %v2762_v30 }
 0x1a0   : > { %v2693_v2 = vpop.f32.mrb[12].mxu0 }
 0x1a1   : > { %v2694_v44 = vpop.f32.mrb[13].mxu0 }
 0x1a2   : > { %v2695_v8 = vadd.f32 %v2694_v44, %v2693_v2  ;;  %v2696_v48 = vpop.f32.mrb[14].mxu0 }
 0x1a3   : > { %v2697_v49 = vpop.f32.mrb[15].mxu0 }
 0x1a4   : > { %v2698_v4 = vadd.f32 %v2697_v49, %v2696_v48  ;;  %v1778_v11 = vadd.f32 %v2695_v8, %v4665_v26 }
 0x1a6   : > { %v1781_v14 = vadd.f32 %v2698_v4, %v4665_v26 }
 0x1ac   : > { %v2765_v25 = vpop.f32.mrb[4].mxu1 }
 0x1ad   : > { %v2766_v58 = vpop.f32.mrb[5].mxu1 }
 0x1ae   : > { %v4658_v6 = vadd.f32 %v2766_v58, %v2765_v25  ;;  %v2768_v47 = vpop.f32.mrb[6].mxu1 }
 0x1af   : > { %v2769_v23 = vpop.f32.mrb[7].mxu1 }
 0x1b0   : > { %v4660_v42 = vadd.f32 %v2769_v23, %v2768_v47 }
 0x1b4   : > { %v2837_v31 = vpop.f32.mrb[8].mxu1 }
 0x1b5   : > { %v1923_v17 = vadd.f32 %v2837_v31, %v1762_v34  ;;  %v1914_v27 = vpop.f32.mrb[9].mxu1 }
 0x1b6   : > { %v1915_v38 = vadd.f32 %v1914_v27, %v1754_v35  ;;  %v2838_v63 = vpop.f32.mrb[10].mxu1 }
 0x1b7   : > { %v1926_v62 = vadd.f32 %v2838_v63, %v1765_v37  ;;  %v1917_v53 = vpop.f32.mrb[11].mxu1  ;;  %v2043_v54 = vmax.f32 %v1923_v17, 0.0 }
 0x1b8   : > { %v1918_v12 = vadd.f32 %v1917_v53, %v1757_v52  ;;  %v2699_v20 = vpop.f32.mrb[16].mxu0  ;;  %v2041_v36 = vmax.f32 %v1915_v38, 0.0 }
 0x1b9   : > { %v2044_v55 = vmax.f32 %v1926_v62, 0.0  ;;  %v2700_v61 = vpop.f32.mrb[17].mxu0 }
 0x1ba   : > { %v2042_v60 = vmax.f32 %v1918_v12, 0.0  ;;  %v2701_v1 = vadd.f32 %v2700_v61, %v2699_v20  ;;  %v2702_v10 = vpop.f32.mrb[18].mxu0 }
 0x1bb   : > { %v4671_v22 = vpack.c.bf16 %v2044_v55, %v2043_v54  ;;  %v2703_v0 = vpop.f32.mrb[19].mxu0 }
 0x1bc   : > { %v4674_v46 = vpack.c.bf16 %v2042_v60, %v2041_v36  ;;  %v2704_v50 = vadd.f32 %v2703_v0, %v2702_v10  ;;  %v2841_v32 = vpop.f32.mrb[12].mxu1  ;;  %v1786_v18 = vadd.f32 %v2701_v1, %v4665_v26 }
 0x1bd   : > { %v1939_v59 = vadd.f32 %v2841_v32, %v1778_v11  ;;  %v1930_v13 = vpop.f32.mrb[13].mxu1 }
 0x1be   : > { %v1931_v28 = vadd.f32 %v1930_v13, %v1770_v57  ;;  %v2842_v41 = vpop.f32.mrb[14].mxu1  ;;  %v1789_v49 = vadd.f32 %v2704_v50, %v4665_v26 }
 0x1bf   : > { %v1942_v45 = vadd.f32 %v2842_v41, %v1781_v14  ;;  %v1933_v7 = vpop.f32.mrb[15].mxu1  ;;  %v2047_v15 = vmax.f32 %v1939_v59, 0.0  ;;  %v2081_v41 = vld [vmem:[%s4872_s4 + $0x18] sm:$0xff] }
 0x1c0   : > { %v1934_v40 = vadd.f32 %v1933_v7, %v1773_v3  ;;  %v2045_v51 = vmax.f32 %v1931_v28, 0.0  ;;  %v2082_v28 = vld [vmem:[%s4872_s4 + $0x20] sm:$0xff]  ;;  %v3475_v3 = vmov 0  }
 0x1c1   : > { %v2048_v29 = vmax.f32 %v1942_v45, 0.0  ;;  %3425 = vset.pattern.permute.xlu1 %v3475_v3  ;;  %3424 = vset.pattern.permute.xlu0 %v3475_v3 }
 0x1c2   : > { %v2046_v33 = vmax.f32 %v1934_v40, 0.0  ;;  %2105 = vperm.xlu1 %3425, %v2082_v28   ;;  %2100 = vperm.xlu0 %3424, %v2081_v41  }
 0x1c3   : > { %v4679_v16 = vpack.c.bf16 %v2048_v29, %v2047_v15  ;;  %v2078_v29 = vld [vmem:[%s4872_s4] sm:$0xff] }
 0x1c4   : > { %v4686_v56 = vpack.c.bf16 %v2046_v33, %v2045_v51  ;;  %v2705_v5 = vpop.f32.mrb[20].mxu0  ;;  %v2845_v24 = vpop.f32.mrb[16].mxu1  ;;  %v2079_v51 = vld [vmem:[%s4872_s4 + $0x8] sm:$0xff] }
 0x1c5   : > { %v2706_v39 = vpop.f32.mrb[21].mxu0  ;;  %v1946_v9 = vpop.f32.mrb[17].mxu1 }
 0x1c6   : > { %v2707_v30 = vadd.f32 %v2706_v39, %v2705_v5  ;;  %v2708_v2 = vpop.f32.mrb[22].mxu0  ;;  %v1947_v44 = vadd.f32 %v1946_v9, %v1786_v18  ;;  %v2846_v8 = vpop.f32.mrb[18].mxu1  ;;  %2085 = vperm.xlu1 %3425, %v2078_v29   ;;  %2090 = vperm.xlu0 %3424, %v2079_v51  }
 0x1c7   : > { %v2709_v48 = vpop.f32.mrb[23].mxu0  ;;  %v1949_v58 = vpop.f32.mrb[19].mxu1 }
 0x1c8   : > { %v1794_v4 = vadd.f32 %v2707_v30, %v4665_v26  ;;  %v2710_v25 = vadd.f32 %v2709_v48, %v2708_v2  ;;  %v1950_v47 = vadd.f32 %v1949_v58, %v1789_v49  ;;  %v2049_v31 = vmax.f32 %v1947_v44, 0.0  ;;  %v2080_v44 = vld [vmem:[%s4872_s4 + $0x10] sm:$0xff] }
 0x1ca   : > { %v1955_v23 = vadd.f32 %v2845_v24, %v1794_v4  ;;  %v1797_v34 = vadd.f32 %v2710_v25, %v4665_v26  ;;  %v2050_v35 = vmax.f32 %v1950_v47, 0.0  ;;  %2095 = vperm.xlu1 %3425, %v2080_v44  }
 0x1cc   : > { %v1958_v17 = vadd.f32 %v2846_v8, %v1797_v34  ;;  %v4694_v27 = vpack.c.bf16 %v2050_v35, %v2049_v31  ;;  %v2849_v37 = vpop.f32.mrb[20].mxu1  ;;  %v2051_v38 = vmax.f32 %v1955_v23, 0.0 }
 0x1cd   : > { %v1962_v52 = vpop.f32.mrb[21].mxu1 }
 0x1ce   : > { %v2052_v63 = vmax.f32 %v1958_v17, 0.0  ;;  %v2850_v62 = vpop.f32.mrb[22].mxu1 }
 0x1cf   : > { %v1965_v20 = vpop.f32.mrb[23].mxu1 }
 0x1d0   : > { %v4696_v53 = vpack.c.bf16 %v2052_v63, %v2051_v38  ;;  %v2711_v12 = vpop.f32.mrb[24].mxu0 }
 0x1d1   : > { %v2712_v54 = vpop.f32.mrb[25].mxu0 }
 0x1d2   : > { %v2713_v55 = vadd.f32 %v2712_v54, %v2711_v12  ;;  %v2714_v61 = vpop.f32.mrb[26].mxu0  ;;  %v1874_v12 = vadd.f32 %v4658_v6, %v4665_v26  ;;  %v1866_v54 = vadd.f32 %v4654_v19, %v4665_v26 }
 0x1d3   : > { %v2715_v36 = vpop.f32.mrb[27].mxu0 }
 0x1d4   : > { %v2716_v60 = vadd.f32 %v2715_v36, %v2714_v61  ;;  %v1802_v1 = vadd.f32 %v2713_v55, %v4665_v26  ;;  %v4699_v10 = vpop.f32.mrb[24].mxu1 }
 0x1d5   : > { %v1978_v50 = vpop.f32.mrb[25].mxu1 }
 0x1d6   : > { %v1963_v0 = vadd.f32 %v1962_v52, %v1802_v1  ;;  %v1805_v11 = vadd.f32 %v2716_v60, %v4665_v26  ;;  %v4702_v32 = vpop.f32.mrb[26].mxu1  ;;  %v1877_v1 = vadd.f32 %v4660_v42, %v4665_v26 }
 0x1d7   : > { %v1981_v59 = vpop.f32.mrb[27].mxu1 }
 0x1d8   : > { %v1966_v57 = vadd.f32 %v1965_v20, %v1805_v11  ;;  %v2053_v13 = vmax.f32 %v1963_v0, 0.0 }
 0x1da   : > { %v2054_v14 = vmax.f32 %v1966_v57, 0.0  ;;  %v1869_v57 = vadd.f32 %v4656_v21, %v4665_v26 }
 0x1dc   : > { %v4710_v45 = vpack.c.bf16 %v2054_v14, %v2053_v13  ;;  %v2717_v7 = vpop.f32.mrb[28].mxu0  ;;  %v4712_v15 = vpop.f32.mrb[28].mxu1 }
 0x1dd   : > { %v2718_v40 = vpop.f32.mrb[29].mxu0  ;;  %v4720_v24 = vpop.f32.mrb[29].mxu1 }
 0x1de   : > { %v2719_v33 = vadd.f32 %v2718_v40, %v2717_v7  ;;  %v2720_v5 = vpop.f32.mrb[30].mxu0  ;;  %v4722_v18 = vpop.f32.mrb[30].mxu1 }
 0x1df   : > { %v2721_v39 = vpop.f32.mrb[31].mxu0  ;;  %v4725_v2 = vpop.f32.mrb[31].mxu1 }
 0x1e0   : > { %v1810_v30 = vadd.f32 %v2719_v33, %v4665_v26  ;;  %v2722_v9 = vadd.f32 %v2721_v39, %v2720_v5 }
 0x1e2   : > { %v1971_v8 = vadd.f32 %v2849_v37, %v1810_v30  ;;  %v1813_v48 = vadd.f32 %v2722_v9, %v4665_v26 }
 0x1e4   : > { %v1974_v49 = vadd.f32 %v2850_v62, %v1813_v48  ;;  %v4731_v4 = vpop.f32.mrb[32].mxu1  ;;  %v2055_v25 = vmax.f32 %v1971_v8, 0.0 }
 0x1e5   : > { %v4733_v47 = vpop.f32.mrb[33].mxu1 }
 0x1e6   : > { %v2056_v58 = vmax.f32 %v1974_v49, 0.0  ;;  %v4735_v23 = vpop.f32.mrb[34].mxu1 }
 0x1e7   : > { %v4739_v35 = vpop.f32.mrb[35].mxu1 }
 0x1e8   : > { %v4737_v34 = vpack.c.bf16 %v2056_v58, %v2055_v25  ;;  %v2723_v31 = vpop.f32.mrb[32].mxu0 }
 0x1e9   : > { %v2724_v17 = vpop.f32.mrb[33].mxu0 }
 0x1ea   : > { %v2725_v38 = vadd.f32 %v2724_v17, %v2723_v31  ;;  %v2726_v37 = vpop.f32.mrb[34].mxu0 }
 0x1eb   : > { %v2727_v63 = vpop.f32.mrb[35].mxu0 }
 0x1ec   : > { %v1818_v52 = vadd.f32 %v2725_v38, %v4665_v26  ;;  %v2728_v62 = vadd.f32 %v2727_v63, %v2726_v37  ;;  %v2865_v20 = vpop.f32.mrb[36].mxu1 }
 0x1ed   : > { %v2035_v36 = vadd.f32 %v2865_v20, %v1874_v12  ;;  %v2026_v60 = vpop.f32.mrb[37].mxu1 }
 0x1ee   : > { %v1979_v55 = vadd.f32 %v1978_v50, %v1818_v52  ;;  %v1821_v61 = vadd.f32 %v2728_v62, %v4665_v26  ;;  %v2027_v0 = vadd.f32 %v2026_v60, %v1866_v54  ;;  %v2866_v11 = vpop.f32.mrb[38].mxu1 }
 0x1ef   : > { %v2038_v14 = vadd.f32 %v2866_v11, %v1877_v1  ;;  %v2029_v6 = vpop.f32.mrb[39].mxu1  ;;  %v2071_v19 = vmax.f32 %v2035_v36, 0.0 }
 0x1f0   : > { %v1982_v13 = vadd.f32 %v1981_v59, %v1821_v61  ;;  %v2030_v28 = vadd.f32 %v2029_v6, %v1869_v57  ;;  %v2057_v41 = vmax.f32 %v1979_v55, 0.0  ;;  %v2069_v7 = vmax.f32 %v2027_v0, 0.0 }
 0x1f1   : > { %v2072_v50 = vmax.f32 %v2038_v14, 0.0 }
 0x1f2   : > { %v2058_v3 = vmax.f32 %v1982_v13, 0.0  ;;  %v2070_v40 = vmax.f32 %v2030_v28, 0.0 }
 0x1f3   : > { %v4757_v51 = vpack.c.bf16 %v2072_v50, %v2071_v19 }
 0x1f4   : > { %v2867_v42 = vpack.c.bf16 %v2058_v3, %v2057_v41  ;;  %v2729_v21 = vpop.f32.mrb[36].mxu0  ;;  %v4759_v59 = vpack.c.bf16 %v2070_v40, %v2069_v7 }
 0x1f5   : > { %v2730_v33 = vpop.f32.mrb[37].mxu0 }
 0x1f6   : > { %v2731_v5 = vadd.f32 %v2730_v33, %v2729_v21  ;;  %v2732_v39 = vpop.f32.mrb[38].mxu0  ;;  %2869 = vmatprep.subr.msk.bf16.mxu1 %vm4753_vm5, %v2867_v42 }
 0x1f7   : > { %v2733_v30 = vpop.f32.mrb[39].mxu0  ;;  %2872 = vmatpush3.bf16.xpose.msk.msra.mxu1 %vm4753_vm5, %v4674_v46 }
 0x1f8   : > { %v1826_v9 = vadd.f32 %v2731_v5, %v4665_v26  ;;  %v2734_v44 = vadd.f32 %v2733_v30, %v2732_v39 }
 0x1fa   : > { %v1987_v8 = vadd.f32 %v4699_v10, %v1826_v9  ;;  %v1829_v48 = vadd.f32 %v2734_v44, %v4665_v26 }
 0x1fc   : > { %v1990_v49 = vadd.f32 %v4702_v32, %v1829_v48  ;;  %v2059_v25 = vmax.f32 %v1987_v8, 0.0 }
 0x1fe   : > { %v2060_v58 = vmax.f32 %v1990_v49, 0.0 }
 0x200   : > { %v2873_v31 = vpack.c.bf16 %v2060_v58, %v2059_v25  ;;  %v2735_v17 = vpop.f32.mrb[40].mxu0 }
 0x201   : > { %v2736_v38 = vpop.f32.mrb[41].mxu0 }
 0x202   : > { %v2737_v37 = vadd.f32 %v2736_v38, %v2735_v17  ;;  %v2738_v63 = vpop.f32.mrb[42].mxu0  ;;  %2875 = vmatprep.subr.msk.bf16.mxu1 %vm4753_vm5, %v2873_v31 }
 0x203   : > { %v2739_v46 = vpop.f32.mrb[43].mxu0  ;;  %2878 = vmatpush3.bf16.xpose.msk.msra.mxu1 %vm4753_vm5, %v4671_v22 }
 0x204   : > { %v1834_v10 = vadd.f32 %v2737_v37, %v4665_v26  ;;  %v2740_v52 = vadd.f32 %v2739_v46, %v2738_v63 }
 0x206   : > { %v1995_v32 = vadd.f32 %v4720_v24, %v1834_v10  ;;  %v1837_v62 = vadd.f32 %v2740_v52, %v4665_v26 }
 0x208   : > { %v1998_v12 = vadd.f32 %v4725_v2, %v1837_v62  ;;  %v2061_v20 = vmax.f32 %v1995_v32, 0.0 }
 0x20a   : > { %v2062_v54 = vmax.f32 %v1998_v12, 0.0 }
 0x20c   : > { %v2879_v55 = vpack.c.bf16 %v2062_v54, %v2061_v20  ;;  %v2741_v61 = vpop.f32.mrb[44].mxu0 }
 0x20d   : > { %v2742_v36 = vpop.f32.mrb[45].mxu0 }
 0x20e   : > { %v2743_v60 = vadd.f32 %v2742_v36, %v2741_v61  ;;  %v2744_v1 = vpop.f32.mrb[46].mxu0  ;;  %2881 = vmatprep.subr.msk.bf16.mxu1 %vm4753_vm5, %v2879_v55 }
 0x20f   : > { %v2745_v22 = vpop.f32.mrb[47].mxu0  ;;  %2884 = vmatpush3.bf16.xpose.msk.msra.mxu1 %vm4753_vm5, %v4686_v56 }
 0x210   : > { %v1842_v24 = vadd.f32 %v2743_v60, %v4665_v26  ;;  %v2746_v0 = vadd.f32 %v2745_v22, %v2744_v1 }
 0x212   : > { %v2003_v2 = vadd.f32 %v4712_v15, %v1842_v24  ;;  %v1845_v11 = vadd.f32 %v2746_v0, %v4665_v26 }
 0x214   : > { %v2006_v57 = vadd.f32 %v4722_v18, %v1845_v11  ;;  %v2063_v13 = vmax.f32 %v2003_v2, 0.0 }
 0x216   : > { %v2064_v14 = vmax.f32 %v2006_v57, 0.0 }
 0x218   : > { %v2885_v6 = vpack.c.bf16 %v2064_v14, %v2063_v13  ;;  %v2747_v28 = vpop.f32.mrb[48].mxu0 }
 0x219   : > { %v2748_v41 = vpop.f32.mrb[49].mxu0 }
 0x21a   : > { %v2749_v3 = vadd.f32 %v2748_v41, %v2747_v28  ;;  %v2750_v19 = vpop.f32.mrb[50].mxu0  ;;  %2887 = vmatprep.subr.msk.bf16.mxu1 %vm4753_vm5, %v2885_v6  ;;  %v2318_v28 = vld [vmem:[%s4873_s5] sm:$0x77] }
 0x21b   : > { %v2751_v56 = vpop.f32.mrb[51].mxu0  ;;  %2890 = vmatpush3.bf16.xpose.msk.msra.mxu1 %vm4753_vm5, %v4679_v16 }
 0x21c   : > { %v1850_v15 = vadd.f32 %v2749_v3, %v4665_v26  ;;  %v2752_v50 = vadd.f32 %v2751_v56, %v2750_v19  ;;  %v2326_v56 = vcombine.high %v2318_v28, %v2318_v28 }
 0x21e   : > { %v2011_v18 = vadd.f32 %v4733_v47, %v1850_v15  ;;  %v1853_v7 = vadd.f32 %v2752_v50, %v4665_v26  ;;  %v2599_v15 = vld [vmem:[%s4873_s5 + $0x8] sm:$0x77]  ;;  %v2600_v50 = vld [vmem:[%s4873_s5 + $0x10] sm:$0x77] }
 0x220   : > { %v2014_v40 = vadd.f32 %v4739_v35, %v1853_v7  ;;  %v2065_v42 = vmax.f32 %v2011_v18, 0.0 }
 0x222   : > { %v2066_v21 = vmax.f32 %v2014_v40, 0.0 }
 0x224   : > { %v2891_v33 = vpack.c.bf16 %v2066_v21, %v2065_v42  ;;  %v2753_v5 = vpop.f32.mrb[52].mxu0 }
 0x225   : > { %v2754_v39 = vpop.f32.mrb[53].mxu0 }
 0x226   : > { %v2755_v30 = vadd.f32 %v2754_v39, %v2753_v5  ;;  %v2756_v9 = vpop.f32.mrb[54].mxu0  ;;  %2893 = vmatprep.subr.msk.bf16.mxu1 %vm4753_vm5, %v2891_v33  ;;  %v2336_v33 = vcombine.high %v2599_v15, %v2599_v15 }
 0x227   : > { %v2757_v16 = vpop.f32.mrb[55].mxu0  ;;  %2896 = vmatpush3.bf16.xpose.msk.msra.mxu1 %vm4753_vm5, %v4694_v27  ;;  %v2075_v27 = vld [vmem:[%s4871_s3 + $0x10] sm:$0xff] }
 0x228   : > { %v1858_v47 = vadd.f32 %v2755_v30, %v4665_v26  ;;  %v2758_v44 = vadd.f32 %v2757_v16, %v2756_v9  ;;  %v2331_v9 = vcombine.high %v2600_v50, %v2600_v50  ;;  %v2601_v16 = vld [vmem:[%s4873_s5 + $0x18] sm:$0x77] }
 0x22a   : > { %v2019_v35 = vadd.f32 %v4731_v4, %v1858_v47  ;;  %v1861_v8 = vadd.f32 %v2758_v44, %v4665_v26  ;;  %v2074_v26 = vld [vmem:[%s4871_s3 + $0x8] sm:$0xff] }
 0x22c   : > { %v2022_v48 = vadd.f32 %v4735_v23, %v1861_v8  ;;  %v2067_v49 = vmax.f32 %v2019_v35, 0.0 }
 0x22e   : > { %v2068_v25 = vmax.f32 %v2022_v48, 0.0 }
 0x230   : > { %v2897_v58 = vpack.c.bf16 %v2068_v25, %v2067_v49 }
 0x232   : > { %2899 = vmatprep.subr.msk.bf16.mxu1 %vm4753_vm5, %v2897_v58  ;;  %v2341_v58 = vcombine.high %v2601_v16, %v2601_v16 }
 0x233   : > { %2902 = vmatpush3.bf16.xpose.msk.msra.mxu1 %vm4753_vm5, %v4696_v53  ;;  %v2076_v53 = vld [vmem:[%s4871_s3 + $0x18] sm:$0xff] }
 0x234   : > { %2905 = vmatprep.subr.msk.bf16.mxu1 %vm4753_vm5, %v4759_v59 }
 0x23b   : > { %2908 = vmatpush3.bf16.xpose.msk.msra.mxu1 %vm4753_vm5, %v4710_v45 }
 0x23c   : > { %2911 = vmatprep.subr.msk.bf16.mxu1 %vm4753_vm5, %v4757_v51 }
 0x241   : > { %v2106_v45 = vpop.permute.xlu1 %2105  ;;  %v2101_v46 = vpop.permute.xlu0 %2100 }
 0x243   : > { %2914 = vmatpush3.bf16.xpose.msk.msra.mxu1 %vm4753_vm5, %v4737_v34 }
 0x245   : > { %v2086_v4 = vpop.permute.xlu1 %2085  ;;  %v2091_v14 = vpop.permute.xlu0 %2090 }
 0x249   : > { %v2096_v3 = vpop.permute.xlu1 %2095 }
 0x24a   : > { %2822 = vmatmul.mubr.msk.f32.vlgmr.msra.gmra.mrb[40].mxu1 %vm1277_vm2, %v4684_v43  ;;  %v2077_v43 = vld [vmem:[%s4871_s3 + $0x20] sm:$0xff] }
 0x24b   : > { %2823 = vmatprep.mubr.msk.f32.mxu1 %vm1277_vm2, %v2074_v26 }
 0x24e   : > { %2824 = vmatmul.mubr.msk.f32.gmra.mrb[42].mxu1 %vm1277_vm2, %v2074_v26 }
 0x24f   : > { %2825 = vmatprep.mubr.msk.f32.mxu1 %vm1277_vm2, %v2075_v27 }
 0x252   : > { %2826 = vmatmul.mubr.msk.f32.gmra.mrb[44].mxu1 %vm1277_vm2, %v2075_v27 }
 0x253   : > { %2827 = vmatprep.mubr.msk.f32.mxu1 %vm1277_vm2, %v2076_v53 }
 0x256   : > { %2828 = vmatmul.mubr.msk.f32.gmra.mrb[46].mxu1 %vm1277_vm2, %v2076_v53 }
 0x257   : > { %2829 = vmatprep.mubr.msk.f32.mxu1 %vm1277_vm2, %v2077_v43 }
 0x25a   : > { %2830 = vmatmul.mubr.msk.f32.gmra.mrb[48].mxu1 %vm1277_vm2, %v2077_v43 }
 0x31d   : > { %v2285_v23 = vpop.f32.mrb[40].mxu1 }
 0x31e   : > { %v2286_v34 = vadd.f32 %v2285_v23, %v2086_v4  ;;  %v2287_v29 = vpop.f32.mrb[41].mxu1 }
 0x31f   : > { %v2288_v51 = vadd.f32 %v2287_v29, %v2086_v4 }
 0x320   : > { %v2606_v59 = vmul.f32 -1.442695, %v2286_v34 }
 0x321   : > { %v2607_v31 = vmul.f32 -1.442695, %v2288_v51  ;;  %v2291_v17 = vpop.f32.mrb[42].mxu1 }
 0x322   : > { %3448 = vpow2.f32 %v2606_v59  ;;  %v2293_v38 = vpop.f32.mrb[43].mxu1  ;;  %v2292_v41 = vadd.f32 %v2291_v17, %v2091_v14 }
 0x323   : > { %3450 = vpow2.f32 %v2607_v31  ;;  %v2294_v19 = vadd.f32 %v2293_v38, %v2091_v14 }
 0x324   : > { %v2328_v42 = vmul.f32 %v2318_v28, %v2292_v41 }
 0x325   : > { %v2297_v37 = vpop.f32.mrb[44].mxu1  ;;  %v2329_v30 = vmul.f32 %v2326_v56, %v2294_v19 }
 0x326   : > { %v2299_v63 = vpop.f32.mrb[45].mxu1  ;;  %v2298_v7 = vadd.f32 %v2297_v37, %v2096_v3  ;;  %v2333_v49 = vadd.f32 %v2600_v50, %v2328_v42 }
 0x327   : > { %v2300_v21 = vadd.f32 %v2299_v63, %v2096_v3  ;;  %v2334_v53 = vadd.f32 %v2331_v9, %v2329_v30 }
 0x328   : > { %v2338_v35 = vmul.f32 %v2599_v15, %v2298_v7 }
 0x329   : > { %v2303_v10 = vpop.f32.mrb[46].mxu1  ;;  %v2339_v25 = vmul.f32 %v2336_v33, %v2300_v21 }
 0x32a   : > { %v2304_v52 = vadd.f32 %v2303_v10, %v2101_v46  ;;  %v2305_v32 = vpop.f32.mrb[47].mxu1  ;;  %v2343_v29 = vadd.f32 %v2601_v16, %v2338_v35 }
 0x32b   : > { %v2306_v62 = vadd.f32 %v2305_v32, %v2101_v46  ;;  %v2344_v17 = vadd.f32 %v2341_v58, %v2339_v25 }
 0x32c   : > { %v3449_v12 = vpop.eup %3448  ;;  %v2314_v20 = vmin.f32 %v2304_v52, 4.1351666 }
 0x32d   : > { %v3451_v54 = vpop.eup %3450  ;;  %v2395_v55 = vadd.f32 1.0, %v3449_v12  ;;  %v2315_v61 = vmin.f32 %v2306_v62, 4.1351666  ;;  %v2309_v36 = vpop.f32.mrb[48].mxu1 }
 0x32e   : > { %v2396_v60 = vadd.f32 1.0, %v3451_v54  ;;  %v2345_v1 = vmul.f32 1.442695, %v2314_v20  ;;  %v2310_v22 = vadd.f32 %v2309_v36, %v2106_v45  ;;  %v2311_v24 = vpop.f32.mrb[49].mxu1 }
 0x32f   : > { %3452 = vrcp.f32 %v2395_v55  ;;  %v2347_v0 = vmul.f32 1.442695, %v2315_v61  ;;  %v2312_v2 = vadd.f32 %v2311_v24, %v2106_v45 }
 0x330   : > { %3454 = vrcp.f32 %v2396_v60  ;;  %v2316_v11 = vmin.f32 %v2310_v22, 4.1351666 }
 0x331   : > { %3456 = vpow2.f32 %v2345_v1  ;;  %v2317_v57 = vmin.f32 %v2312_v2, 4.1351666 }
 0x332   : > { %3458 = vpow2.f32 %v2347_v0  ;;  %v2351_v13 = vmul.f32 1.442695, %v2316_v11 }
 0x333   : > { %v2353_v6 = vmul.f32 1.442695, %v2317_v57 }
 0x334   : > { %3460 = vpow2.f32 %v2351_v13 }
 0x335   : > { %3462 = vpow2.f32 %v2353_v6 }
 0x339   : > { %v3453_v18 = vpop.eup %3452 }
 0x33a   : > { %v3455_v40 = vpop.eup %3454 }
 0x33b   : > { %v3457_v5 = vpop.eup %3456  ;;  %v2403_v39 = vcombine.low %v3453_v18, %v3455_v40 }
 0x33c   : > { %v3459_v47 = vpop.eup %3458  ;;  %v2349_v44 = vmul.f32 %v3457_v5, %v2318_v28 }
 0x33d   : > { %2405 = vst [vmem:[%s286_s14] sm:$0x77] %v2403_v39  ;;  %v2350_v8 = vmul.f32 %v3459_v47, %v2326_v56 }
 0x33e   : > { %v3461_v48 = vpop.eup %3460  ;;  %v2357_v26 = vmul.f32 0.5, %v2349_v44 }
 0x33f   : > { %v3463_v27 = vpop.eup %3462  ;;  %v2358_v43 = vmul.f32 0.5, %v2350_v8  ;;  %v2355_v45 = vmul.f32 %v3461_v48, %v2599_v15 }
 0x340   : > { %v2359_v4 = vsub.f32 %v2333_v49, %v2357_v26  ;;  %v2373_v23 = vadd.f32 %v2357_v26, %v2333_v49  ;;  %v2356_v34 = vmul.f32 %v3463_v27, %v2336_v33 }
 0x341   : > { %v2360_v51 = vsub.f32 %v2334_v53, %v2358_v43  ;;  %v2374_v59 = vadd.f32 %v2358_v43, %v2334_v53  ;;  %v2365_v31 = vmul.f32 0.5, %v2355_v45 }
 0x342   : > { %v2361_v38 = vmax.f32 %v2359_v4, 0.0  ;;  %v2602_v37 = vadd.f32 -1.0, %v2373_v23  ;;  %v2366_v63 = vmul.f32 0.5, %v2356_v34 }
 0x343   : > { %v2362_v46 = vmax.f32 %v2360_v51, 0.0  ;;  %v2603_v10 = vadd.f32 -1.0, %v2374_v59  ;;  %v2367_v52 = vsub.f32 %v2343_v29, %v2365_v31  ;;  %v2381_v32 = vadd.f32 %v2365_v31, %v2343_v29 }
 0x344   : > { %v2363_v62 = vmin.f32 %v2361_v38, 255.0  ;;  %v2377_v12 = vmax.f32 %v2602_v37, 0.0  ;;  %v2368_v20 = vsub.f32 %v2344_v17, %v2366_v63  ;;  %v2382_v54 = vadd.f32 %v2366_v63, %v2344_v17 }
 0x345   : > { %v2364_v55 = vmin.f32 %v2362_v46, 255.0  ;;  %v2378_v61 = vmax.f32 %v2603_v10, 0.0  ;;  %v2369_v36 = vmax.f32 %v2367_v52, 0.0  ;;  %v2604_v60 = vadd.f32 -1.0, %v2381_v32 }
 0x346   : > { %v2379_v1 = vmin.f32 %v2377_v12, 255.0  ;;  %v2370_v22 = vmax.f32 %v2368_v20, 0.0  ;;  %v2605_v24 = vadd.f32 -1.0, %v2382_v54 }
 0x347   : > { %v2380_v0 = vmin.f32 %v2378_v61, 255.0  ;;  %v2408_v2 = vcombine.low %v2363_v62, %v2364_v55  ;;  %v2371_v11 = vmin.f32 %v2369_v36, 255.0  ;;  %v2385_v57 = vmax.f32 %v2604_v60, 0.0 }
 0x348   : > { %v2372_v13 = vmin.f32 %v2370_v22, 255.0  ;;  %v2386_v14 = vmax.f32 %v2605_v24, 0.0 }
 0x349   : > { %2410 = vst [vmem:[%s291_s26] sm:$0x77] %v2408_v2  ;;  %v2419_v6 = vcombine.low %v2379_v1, %v2380_v0  ;;  %v2387_v28 = vmin.f32 %v2385_v57, 255.0 }
 0x34a   : > { %v2388_v41 = vmin.f32 %v2386_v14, 255.0  ;;  %v2413_v3 = vcombine.low %v2371_v11, %v2372_v13 }
 0x34b   : > { %2609 = vst [vmem:[%s291_s26 + $0x10] sm:$0x77] %v2419_v6 }
 0x34c   : > { %2608 = vst [vmem:[%s291_s26 + $0x8] sm:$0x77] %v2413_v3  ;;  %v2425_v19 = vcombine.low %v2387_v28, %v2388_v41 }
 0x34e   : > { %2610 = vst [vmem:[%s291_s26 + $0x18] sm:$0x77] %v2425_v19 }
 0x34f PF: > { %s18_s24 = sadd.s32 1, %s3470_s24  }
 0x350   : > { %p15_p4 = scmp.ge.s32.totalorder %s18_s24, 4  }
 0x352   :  { %17 = sbr.rel (!%p15_p4) target bundleno = 1 (0x1), region = 92 }

</bundles_post_ra>
